<compile_context>
chip_gen: v7x
topology: tpu7x:2x2x1
jax: 0.10.0
libtpu: 0.0.40
codegen_flags: <defaults>
</compile_context>

<pallas_src>
import functools

import jax
import jax.numpy as jnp
from jax.experimental import pallas as pl
from jax.experimental.pallas import tpu as pltpu

F32 = jnp.float32
VMEM_SPEC = pl.BlockSpec(memory_space=pltpu.MemorySpace.VMEM)


# ----------------------------------------------------------------------------
# Fused forward kernel
# ----------------------------------------------------------------------------
def _fused_forward_kernel(T, B, P, H,
                          xrel_ref, relpair_ref, info_ref,
                          enc_wemb, enc_bemb, enc_wih, enc_whh, enc_b,
                          pool_wemb, pool_bemb, pool_w1a, pool_w1b, pool_b1,
                          pool_w2, pool_b2,
                          w1_hid, w1_pool, w1_info, b1,
                          w2, b2, w3, b3, w4, b4,
                          out_ref):
    N = B * P

    # ---------------- LSTM encoder over relative trajectories ----------------
    x = xrel_ref[...]                                             # (T*N, 2)
    # spatial embedding, K=2 contraction on the VPU (not worth an MXU push)
    emb_all = (x[:, 0:1] * enc_wemb[0:1, :]
               + x[:, 1:2] * enc_wemb[1:2, :]
               + enc_bemb[...])                                   # (T*N, E)
    # hoisted input projection + fused gate bias: ONE big matmul, done once
    x_proj = (jnp.dot(emb_all, enc_wih[...], preferred_element_type=F32)
              + enc_b[...])                                       # (T*N, 4H)

    whh = enc_whh[...]                                            # (H, 4H)
    h = jnp.zeros((N, H), F32)
    c = jnp.zeros((N, H), F32)
    # T is small & fixed -> static unroll gives the scheduler full visibility
    for t in range(T):
        gates = (x_proj[t * N:(t + 1) * N, :]
                 + jnp.dot(h, whh, preferred_element_type=F32))   # (N, 4H)
        i_g = jax.nn.sigmoid(gates[:, 0:H])
        f_g = jax.nn.sigmoid(gates[:, H:2 * H])
        g_g = jnp.tanh(gates[:, 2 * H:3 * H])
        o_g = jax.nn.sigmoid(gates[:, 3 * H:4 * H])
        c = f_g * c + i_g * g_g
        h = o_g * jnp.tanh(c)
    hidden = h                                                    # (N, H)

    # ---------------- PoolHiddenNet (pairwise rel-pos + max over peds) -------
    # relpair rows are j-major: row j*N + (b*P + i) = end_pos[b,j] - end_pos[b,i]
    rel = relpair_ref[...]                                        # (P*N, 2)
    emb_pair = (rel[:, 0:1] * pool_wemb[0:1, :]
                + rel[:, 1:2] * pool_wemb[1:2, :]
                + pool_bemb[...])                                 # (P*N, EP)
    pre1 = (jnp.dot(emb_pair, pool_w1a[...], preferred_element_type=F32)
            + pool_b1[...])                                       # (P*N, M1)
    # hidden contribution computed ONCE on the N unique rows (not P*N)
    h_proj = jnp.dot(hidden, pool_w1b[...], preferred_element_type=F32)  # (N, M1)
    M1 = h_proj.shape[1]

    w2p = pool_w2[...]
    b2p = pool_b2[...]
    pool = None
    for j in range(P):
        # For block j, row (b*P + i) needs h_proj[b*P + j]: broadcast that row
        # over the P rows of each batch group.
        hp_j = jnp.concatenate(
            [jnp.broadcast_to(h_proj[b * P + j:b * P + j + 1, :], (P, M1))
             for b in range(B)], axis=0)                          # (N, M1)
        h1 = jnp.maximum(pre1[j * N:(j + 1) * N, :] + hp_j, 0.0)
        h2 = jnp.maximum(jnp.dot(h1, w2p, preferred_element_type=F32) + b2p,
                         0.0)                                     # (N, PD)
        # max-pool over neighbours j stays elementwise on the VPU
        pool = h2 if pool is None else jnp.maximum(pool, h2)

    # ---------------- robot-row select (row b*P) + policy MLP ----------------
    hid_robot = jnp.concatenate(
        [hidden[b * P:b * P + 1, :] for b in range(B)], axis=0)   # (B, H)
    pool_robot = jnp.concatenate(
        [pool[b * P:b * P + 1, :] for b in range(B)], axis=0)     # (B, PD)

    hm = jnp.maximum(
        jnp.dot(hid_robot, w1_hid[...], preferred_element_type=F32)
        + jnp.dot(pool_robot, w1_pool[...], preferred_element_type=F32)
        + jnp.dot(info_ref[...], w1_info[...], preferred_element_type=F32)
        + b1[...], 0.0)
    hm = jnp.maximum(jnp.dot(hm, w2[...], preferred_element_type=F32) + b2[...], 0.0)
    hm = jnp.maximum(jnp.dot(hm, w3[...], preferred_element_type=F32) + b3[...], 0.0)
    out_ref[...] = jnp.dot(hm, w4[...], preferred_element_type=F32) + b4[...]


# ----------------------------------------------------------------------------
# Forward pass wrapper (only tiny layout prep stays in JAX; one pallas_call)
# ----------------------------------------------------------------------------
@jax.jit
def value_network_forward(trajs, rel_trajs, self_info, params):
    B, T, P, _ = trajs.shape                  # [batch, obs_len, num_peds, 2]
    H = params["enc_whh"].shape[0]
    N = B * P

    # torch: permute(1,0,2,3).view(obs_len, -1, 2); flatten time into rows
    rel_seq = jnp.transpose(rel_trajs, (1, 0, 2, 3)).reshape(T * N, 2)

    # end positions = trajs at last timestep, per (batch, ped)
    end_pos = trajs[:, -1, :, :]                                  # (B, P, 2)
    # pairwise relative positions, j-major rows: row j*N + b*P + i
    rel_pair = (jnp.transpose(end_pos, (1, 0, 2))[:, :, None, :]  # pos[b, j]
                - end_pos[None, :, :, :])                         # pos[b, i]
    rel_pair = rel_pair.reshape(P * N, 2)

    args = (rel_seq, rel_pair, self_info,
            params["enc_wemb"], params["enc_bemb"],
            params["enc_wih"], params["enc_whh"], params["enc_b"],
            params["pool_wemb"], params["pool_bemb"],
            params["pool_w1a"], params["pool_w1b"], params["pool_b1"],
            params["pool_w2"], params["pool_b2"],
            params["mlp_w1_hid"], params["mlp_w1_pool"], params["mlp_w1_info"],
            params["mlp_b1"],
            params["mlp_w2"], params["mlp_b2"],
            params["mlp_w3"], params["mlp_b3"],
            params["mlp_w4"], params["mlp_b4"])

    out_dim = params["mlp_w4"].shape[1]
    return pl.pallas_call(
        functools.partial(_fused_forward_kernel, T, B, P, H),
        out_shape=jax.ShapeDtypeStruct((B, out_dim), F32),
        in_specs=[VMEM_SPEC] * len(args),
        out_specs=VMEM_SPEC,
    )(*args)


# ----------------------------------------------------------------------------
# Deterministic parameter construction (synthetic, shapes per module __init__)
# ----------------------------------------------------------------------------
def _linear(key, din, dout):
    kw, kb = jax.random.split(key)
    bound = 1.0 / (din ** 0.5)
    w = jax.random.uniform(kw, (din, dout), F32, -bound, bound)
    b = jax.random.uniform(kb, (1, dout), F32, -bound, bound)
    return w, b


def init_params(key, *, E, H, EP, M1, PD, INFO, mlp_dims=(64, 32, 16, 2)):
    keys = jax.random.split(key, 20)
    p = {}
    # encoder: spatial embedding + LSTM(E -> H), fused gate order i, f, g, o
    p["enc_wemb"], p["enc_bemb"] = _linear(keys[0], 2, E)
    wih, whh, bs = [], [], []
    for idx in range(4):
        wi, _ = _linear(keys[1 + idx], E, H)
        wh, b = _linear(keys[5 + idx], H, H)
        wih.append(wi); whh.append(wh); bs.append(b)
    p["enc_wih"] = jnp.concatenate(wih, axis=1)          # (E, 4H)
    p["enc_whh"] = jnp.concatenate(whh, axis=1)          # (H, 4H)
    p["enc_b"] = jnp.concatenate(bs, axis=1)             # (1, 4H)
    # pool net: spatial embedding + pre-pool MLP [EP+H -> M1 -> PD]
    p["pool_wemb"], p["pool_bemb"] = _linear(keys[9], 2, EP)
    w1, b1 = _linear(keys[10], EP + H, M1)
    p["pool_w1a"], p["pool_w1b"], p["pool_b1"] = w1[:EP], w1[EP:], b1
    p["pool_w2"], p["pool_b2"] = _linear(keys[11], M1, PD)
    # policy mlp: [H + PD + INFO, 64, 32, 16, 2]; first layer split by input block
    w, b = _linear(keys[12], H + PD + INFO, mlp_dims[0])
    p["mlp_w1_hid"] = w[:H]
    p["mlp_w1_pool"] = w[H:H + PD]
    p["mlp_w1_info"] = w[H + PD:]
    p["mlp_b1"] = b
    din = mlp_dims[0]
    for i, dout in enumerate(mlp_dims[1:], start=2):
        p[f"mlp_w{i}"], p[f"mlp_b{i}"] = _linear(keys[12 + i], din, dout)
        din = dout
    return p


if __name__ == "__main__":
    B, P, T = 2, 4, 8                 # batch, num_peds (robot + 3 humans), obs_len
    H, E = 64, 32                     # encoder h_dim, spatial embedding dim
    EP, M1, PD = 32, 128, 64          # pool embedding, pre-pool hidden, pool output dim
    INFO = 8                          # info_dim

    key = jax.random.PRNGKey(0)
    k1, k2, k3, kp = jax.random.split(key, 4)
    trajs = jax.random.normal(k1, (B, T, P, 2), F32)
    rel_trajs = jax.random.normal(k2, (B, T, P, 2), F32)
    self_info = jax.random.normal(k3, (B, INFO), F32)

    params = init_params(kp, E=E, H=H, EP=EP, M1=M1, PD=PD, INFO=INFO)

    value = value_network_forward(trajs, rel_trajs, self_info, params)
    value = jax.block_until_ready(value)
    assert value.shape == (B, 2), value.shape
    print("KERNEL_OK")
</pallas_src>

<mosaic_0001>
module attributes {stable_mosaic.version = 11 : i64} {
  func.func @_fused_forward_kernel(%arg0: memref<64x2xf32, #tpu.memory_space<vmem>>, %arg1: memref<32x2xf32, #tpu.memory_space<vmem>>, %arg2: memref<2x8xf32, #tpu.memory_space<vmem>>, %arg3: memref<2x32xf32, #tpu.memory_space<vmem>>, %arg4: memref<1x32xf32, #tpu.memory_space<vmem>>, %arg5: memref<32x256xf32, #tpu.memory_space<vmem>>, %arg6: memref<64x256xf32, #tpu.memory_space<vmem>>, %arg7: memref<1x256xf32, #tpu.memory_space<vmem>>, %arg8: memref<2x32xf32, #tpu.memory_space<vmem>>, %arg9: memref<1x32xf32, #tpu.memory_space<vmem>>, %arg10: memref<32x128xf32, #tpu.memory_space<vmem>>, %arg11: memref<64x128xf32, #tpu.memory_space<vmem>>, %arg12: memref<1x128xf32, #tpu.memory_space<vmem>>, %arg13: memref<128x64xf32, #tpu.memory_space<vmem>>, %arg14: memref<1x64xf32, #tpu.memory_space<vmem>>, %arg15: memref<64x64xf32, #tpu.memory_space<vmem>>, %arg16: memref<64x64xf32, #tpu.memory_space<vmem>>, %arg17: memref<8x64xf32, #tpu.memory_space<vmem>>, %arg18: memref<1x64xf32, #tpu.memory_space<vmem>>, %arg19: memref<64x32xf32, #tpu.memory_space<vmem>>, %arg20: memref<1x32xf32, #tpu.memory_space<vmem>>, %arg21: memref<32x16xf32, #tpu.memory_space<vmem>>, %arg22: memref<1x16xf32, #tpu.memory_space<vmem>>, %arg23: memref<16x2xf32, #tpu.memory_space<vmem>>, %arg24: memref<1x2xf32, #tpu.memory_space<vmem>>, %arg25: memref<2x2xf32, #tpu.memory_space<vmem>>) attributes {dimension_semantics = [], scalar_prefetch = 0 : i64, scratch_operands = 0 : i64, tpu.core_type = #tpu.core_type<tc>} {
    %c0 = arith.constant 0 : index
    %c0_0 = arith.constant 0 : index
    %0 = vector.load %arg0[%c0, %c0_0] : memref<64x2xf32, #tpu.memory_space<vmem>>, vector<64x2xf32>
    %1 = vector.extract_strided_slice %0 {offsets = [0, 0], sizes = [64, 1], strides = [1, 1]} : vector<64x2xf32> to vector<64x1xf32>
    %c0_1 = arith.constant 0 : index
    %c0_2 = arith.constant 0 : index
    %2 = vector.load %arg3[%c0_1, %c0_2] : memref<2x32xf32, #tpu.memory_space<vmem>>, vector<1x32xf32>
    %3 = vector.broadcast %1 : vector<64x1xf32> to vector<64x32xf32>
    %4 = vector.broadcast %2 : vector<1x32xf32> to vector<64x32xf32>
    %5 = arith.mulf %3, %4 : vector<64x32xf32>
    %6 = vector.extract_strided_slice %0 {offsets = [0, 1], sizes = [64, 1], strides = [1, 1]} : vector<64x2xf32> to vector<64x1xf32>
    %c1 = arith.constant 1 : index
    %c0_3 = arith.constant 0 : index
    %7 = vector.load %arg3[%c1, %c0_3] : memref<2x32xf32, #tpu.memory_space<vmem>>, vector<1x32xf32>
    %8 = vector.broadcast %6 : vector<64x1xf32> to vector<64x32xf32>
    %9 = vector.broadcast %7 : vector<1x32xf32> to vector<64x32xf32>
    %10 = arith.mulf %8, %9 : vector<64x32xf32>
    %11 = arith.addf %5, %10 : vector<64x32xf32>
    %c0_4 = arith.constant 0 : index
    %c0_5 = arith.constant 0 : index
    %12 = vector.load %arg4[%c0_4, %c0_5] : memref<1x32xf32, #tpu.memory_space<vmem>>, vector<1x32xf32>
    %13 = vector.broadcast %12 : vector<1x32xf32> to vector<64x32xf32>
    %14 = arith.addf %11, %13 : vector<64x32xf32>
    %c0_6 = arith.constant 0 : index
    %c0_7 = arith.constant 0 : index
    %15 = vector.load %arg5[%c0_6, %c0_7] : memref<32x256xf32, #tpu.memory_space<vmem>>, vector<32x256xf32>
    %cst = arith.constant dense<0.000000e+00> : vector<64x256xf32>
    %16 = tpu.matmul %14, %15, %cst {dimension_numbers = #tpu.dot_dimension_numbers<[1], [0], [0], [1], [0, 0, 1, 1], [], []>} : vector<64x32xf32>, vector<32x256xf32>, vector<64x256xf32> -> vector<64x256xf32>
    %c0_8 = arith.constant 0 : index
    %c0_9 = arith.constant 0 : index
    %17 = vector.load %arg7[%c0_8, %c0_9] : memref<1x256xf32, #tpu.memory_space<vmem>>, vector<1x256xf32>
    %18 = vector.broadcast %17 : vector<1x256xf32> to vector<64x256xf32>
    %19 = arith.addf %16, %18 : vector<64x256xf32>
    %c0_10 = arith.constant 0 : index
    %c0_11 = arith.constant 0 : index
    %20 = vector.load %arg6[%c0_10, %c0_11] : memref<64x256xf32, #tpu.memory_space<vmem>>, vector<64x256xf32>
    %cst_12 = arith.constant 0.000000e+00 : f32
    %21 = vector.broadcast %cst_12 : f32 to vector<8x64xf32>
    %cst_13 = arith.constant 0.000000e+00 : f32
    %22 = vector.broadcast %cst_13 : f32 to vector<8x64xf32>
    %23 = vector.extract_strided_slice %19 {offsets = [0, 0], sizes = [8, 256], strides = [1, 1]} : vector<64x256xf32> to vector<8x256xf32>
    %cst_14 = arith.constant dense<0.000000e+00> : vector<8x256xf32>
    %24 = tpu.matmul %21, %20, %cst_14 {dimension_numbers = #tpu.dot_dimension_numbers<[1], [0], [0], [1], [0, 0, 1, 1], [], []>} : vector<8x64xf32>, vector<64x256xf32>, vector<8x256xf32> -> vector<8x256xf32>
    %25 = arith.addf %23, %24 : vector<8x256xf32>
    %26 = vector.extract_strided_slice %25 {offsets = [0, 0], sizes = [8, 64], strides = [1, 1]} : vector<8x256xf32> to vector<8x64xf32>
    %27 = arith.negf %26 : vector<8x64xf32>
    %28 = math.exp %27 : vector<8x64xf32>
    %cst_15 = arith.constant 1.000000e+00 : f32
    %29 = vector.broadcast %cst_15 : f32 to vector<8x64xf32>
    %30 = arith.addf %29, %28 : vector<8x64xf32>
    %31 = arith.divf %29, %30 : vector<8x64xf32>
    %32 = vector.extract_strided_slice %25 {offsets = [0, 64], sizes = [8, 64], strides = [1, 1]} : vector<8x256xf32> to vector<8x64xf32>
    %33 = arith.negf %32 : vector<8x64xf32>
    %34 = math.exp %33 : vector<8x64xf32>
    %cst_16 = arith.constant 1.000000e+00 : f32
    %35 = vector.broadcast %cst_16 : f32 to vector<8x64xf32>
    %36 = arith.addf %35, %34 : vector<8x64xf32>
    %37 = arith.divf %35, %36 : vector<8x64xf32>
    %38 = vector.extract_strided_slice %25 {offsets = [0, 128], sizes = [8, 64], strides = [1, 1]} : vector<8x256xf32> to vector<8x64xf32>
    %39 = math.tanh %38 : vector<8x64xf32>
    %40 = vector.extract_strided_slice %25 {offsets = [0, 192], sizes = [8, 64], strides = [1, 1]} : vector<8x256xf32> to vector<8x64xf32>
    %41 = arith.negf %40 : vector<8x64xf32>
    %42 = math.exp %41 : vector<8x64xf32>
    %cst_17 = arith.constant 1.000000e+00 : f32
    %43 = vector.broadcast %cst_17 : f32 to vector<8x64xf32>
    %44 = arith.addf %43, %42 : vector<8x64xf32>
    %45 = arith.divf %43, %44 : vector<8x64xf32>
    %46 = arith.mulf %37, %22 : vector<8x64xf32>
    %47 = arith.mulf %31, %39 : vector<8x64xf32>
    %48 = arith.addf %46, %47 : vector<8x64xf32>
    %49 = math.tanh %48 : vector<8x64xf32>
    %50 = arith.mulf %45, %49 : vector<8x64xf32>
    %51 = vector.extract_strided_slice %19 {offsets = [8, 0], sizes = [8, 256], strides = [1, 1]} : vector<64x256xf32> to vector<8x256xf32>
    %cst_18 = arith.constant dense<0.000000e+00> : vector<8x256xf32>
    %52 = tpu.matmul %50, %20, %cst_18 {dimension_numbers = #tpu.dot_dimension_numbers<[1], [0], [0], [1], [0, 0, 1, 1], [], []>} : vector<8x64xf32>, vector<64x256xf32>, vector<8x256xf32> -> vector<8x256xf32>
    %53 = arith.addf %51, %52 : vector<8x256xf32>
    %54 = vector.extract_strided_slice %53 {offsets = [0, 0], sizes = [8, 64], strides = [1, 1]} : vector<8x256xf32> to vector<8x64xf32>
    %55 = arith.negf %54 : vector<8x64xf32>
    %56 = math.exp %55 : vector<8x64xf32>
    %cst_19 = arith.constant 1.000000e+00 : f32
    %57 = vector.broadcast %cst_19 : f32 to vector<8x64xf32>
    %58 = arith.addf %57, %56 : vector<8x64xf32>
    %59 = arith.divf %57, %58 : vector<8x64xf32>
    %60 = vector.extract_strided_slice %53 {offsets = [0, 64], sizes = [8, 64], strides = [1, 1]} : vector<8x256xf32> to vector<8x64xf32>
    %61 = arith.negf %60 : vector<8x64xf32>
    %62 = math.exp %61 : vector<8x64xf32>
    %cst_20 = arith.constant 1.000000e+00 : f32
    %63 = vector.broadcast %cst_20 : f32 to vector<8x64xf32>
    %64 = arith.addf %63, %62 : vector<8x64xf32>
    %65 = arith.divf %63, %64 : vector<8x64xf32>
    %66 = vector.extract_strided_slice %53 {offsets = [0, 128], sizes = [8, 64], strides = [1, 1]} : vector<8x256xf32> to vector<8x64xf32>
    %67 = math.tanh %66 : vector<8x64xf32>
    %68 = vector.extract_strided_slice %53 {offsets = [0, 192], sizes = [8, 64], strides = [1, 1]} : vector<8x256xf32> to vector<8x64xf32>
    %69 = arith.negf %68 : vector<8x64xf32>
    %70 = math.exp %69 : vector<8x64xf32>
    %cst_21 = arith.constant 1.000000e+00 : f32
    %71 = vector.broadcast %cst_21 : f32 to vector<8x64xf32>
    %72 = arith.addf %71, %70 : vector<8x64xf32>
    %73 = arith.divf %71, %72 : vector<8x64xf32>
    %74 = arith.mulf %65, %48 : vector<8x64xf32>
    %75 = arith.mulf %59, %67 : vector<8x64xf32>
    %76 = arith.addf %74, %75 : vector<8x64xf32>
    %77 = math.tanh %76 : vector<8x64xf32>
    %78 = arith.mulf %73, %77 : vector<8x64xf32>
    %79 = vector.extract_strided_slice %19 {offsets = [16, 0], sizes = [8, 256], strides = [1, 1]} : vector<64x256xf32> to vector<8x256xf32>
    %cst_22 = arith.constant dense<0.000000e+00> : vector<8x256xf32>
    %80 = tpu.matmul %78, %20, %cst_22 {dimension_numbers = #tpu.dot_dimension_numbers<[1], [0], [0], [1], [0, 0, 1, 1], [], []>} : vector<8x64xf32>, vector<64x256xf32>, vector<8x256xf32> -> vector<8x256xf32>
    %81 = arith.addf %79, %80 : vector<8x256xf32>
    %82 = vector.extract_strided_slice %81 {offsets = [0, 0], sizes = [8, 64], strides = [1, 1]} : vector<8x256xf32> to vector<8x64xf32>
    %83 = arith.negf %82 : vector<8x64xf32>
    %84 = math.exp %83 : vector<8x64xf32>
    %cst_23 = arith.constant 1.000000e+00 : f32
    %85 = vector.broadcast %cst_23 : f32 to vector<8x64xf32>
    %86 = arith.addf %85, %84 : vector<8x64xf32>
    %87 = arith.divf %85, %86 : vector<8x64xf32>
    %88 = vector.extract_strided_slice %81 {offsets = [0, 64], sizes = [8, 64], strides = [1, 1]} : vector<8x256xf32> to vector<8x64xf32>
    %89 = arith.negf %88 : vector<8x64xf32>
    %90 = math.exp %89 : vector<8x64xf32>
    %cst_24 = arith.constant 1.000000e+00 : f32
    %91 = vector.broadcast %cst_24 : f32 to vector<8x64xf32>
    %92 = arith.addf %91, %90 : vector<8x64xf32>
    %93 = arith.divf %91, %92 : vector<8x64xf32>
    %94 = vector.extract_strided_slice %81 {offsets = [0, 128], sizes = [8, 64], strides = [1, 1]} : vector<8x256xf32> to vector<8x64xf32>
    %95 = math.tanh %94 : vector<8x64xf32>
    %96 = vector.extract_strided_slice %81 {offsets = [0, 192], sizes = [8, 64], strides = [1, 1]} : vector<8x256xf32> to vector<8x64xf32>
    %97 = arith.negf %96 : vector<8x64xf32>
    %98 = math.exp %97 : vector<8x64xf32>
    %cst_25 = arith.constant 1.000000e+00 : f32
    %99 = vector.broadcast %cst_25 : f32 to vector<8x64xf32>
    %100 = arith.addf %99, %98 : vector<8x64xf32>
    %101 = arith.divf %99, %100 : vector<8x64xf32>
    %102 = arith.mulf %93, %76 : vector<8x64xf32>
    %103 = arith.mulf %87, %95 : vector<8x64xf32>
    %104 = arith.addf %102, %103 : vector<8x64xf32>
    %105 = math.tanh %104 : vector<8x64xf32>
    %106 = arith.mulf %101, %105 : vector<8x64xf32>
    %107 = vector.extract_strided_slice %19 {offsets = [24, 0], sizes = [8, 256], strides = [1, 1]} : vector<64x256xf32> to vector<8x256xf32>
    %cst_26 = arith.constant dense<0.000000e+00> : vector<8x256xf32>
    %108 = tpu.matmul %106, %20, %cst_26 {dimension_numbers = #tpu.dot_dimension_numbers<[1], [0], [0], [1], [0, 0, 1, 1], [], []>} : vector<8x64xf32>, vector<64x256xf32>, vector<8x256xf32> -> vector<8x256xf32>
    %109 = arith.addf %107, %108 : vector<8x256xf32>
    %110 = vector.extract_strided_slice %109 {offsets = [0, 0], sizes = [8, 64], strides = [1, 1]} : vector<8x256xf32> to vector<8x64xf32>
    %111 = arith.negf %110 : vector<8x64xf32>
    %112 = math.exp %111 : vector<8x64xf32>
    %cst_27 = arith.constant 1.000000e+00 : f32
    %113 = vector.broadcast %cst_27 : f32 to vector<8x64xf32>
    %114 = arith.addf %113, %112 : vector<8x64xf32>
    %115 = arith.divf %113, %114 : vector<8x64xf32>
    %116 = vector.extract_strided_slice %109 {offsets = [0, 64], sizes = [8, 64], strides = [1, 1]} : vector<8x256xf32> to vector<8x64xf32>
    %117 = arith.negf %116 : vector<8x64xf32>
    %118 = math.exp %117 : vector<8x64xf32>
    %cst_28 = arith.constant 1.000000e+00 : f32
    %119 = vector.broadcast %cst_28 : f32 to vector<8x64xf32>
    %120 = arith.addf %119, %118 : vector<8x64xf32>
    %121 = arith.divf %119, %120 : vector<8x64xf32>
    %122 = vector.extract_strided_slice %109 {offsets = [0, 128], sizes = [8, 64], strides = [1, 1]} : vector<8x256xf32> to vector<8x64xf32>
    %123 = math.tanh %122 : vector<8x64xf32>
    %124 = vector.extract_strided_slice %109 {offsets = [0, 192], sizes = [8, 64], strides = [1, 1]} : vector<8x256xf32> to vector<8x64xf32>
    %125 = arith.negf %124 : vector<8x64xf32>
    %126 = math.exp %125 : vector<8x64xf32>
    %cst_29 = arith.constant 1.000000e+00 : f32
    %127 = vector.broadcast %cst_29 : f32 to vector<8x64xf32>
    %128 = arith.addf %127, %126 : vector<8x64xf32>
    %129 = arith.divf %127, %128 : vector<8x64xf32>
    %130 = arith.mulf %121, %104 : vector<8x64xf32>
    %131 = arith.mulf %115, %123 : vector<8x64xf32>
    %132 = arith.addf %130, %131 : vector<8x64xf32>
    %133 = math.tanh %132 : vector<8x64xf32>
    %134 = arith.mulf %129, %133 : vector<8x64xf32>
    %135 = vector.extract_strided_slice %19 {offsets = [32, 0], sizes = [8, 256], strides = [1, 1]} : vector<64x256xf32> to vector<8x256xf32>
    %cst_30 = arith.constant dense<0.000000e+00> : vector<8x256xf32>
    %136 = tpu.matmul %134, %20, %cst_30 {dimension_numbers = #tpu.dot_dimension_numbers<[1], [0], [0], [1], [0, 0, 1, 1], [], []>} : vector<8x64xf32>, vector<64x256xf32>, vector<8x256xf32> -> vector<8x256xf32>
    %137 = arith.addf %135, %136 : vector<8x256xf32>
    %138 = vector.extract_strided_slice %137 {offsets = [0, 0], sizes = [8, 64], strides = [1, 1]} : vector<8x256xf32> to vector<8x64xf32>
    %139 = arith.negf %138 : vector<8x64xf32>
    %140 = math.exp %139 : vector<8x64xf32>
    %cst_31 = arith.constant 1.000000e+00 : f32
    %141 = vector.broadcast %cst_31 : f32 to vector<8x64xf32>
    %142 = arith.addf %141, %140 : vector<8x64xf32>
    %143 = arith.divf %141, %142 : vector<8x64xf32>
    %144 = vector.extract_strided_slice %137 {offsets = [0, 64], sizes = [8, 64], strides = [1, 1]} : vector<8x256xf32> to vector<8x64xf32>
    %145 = arith.negf %144 : vector<8x64xf32>
    %146 = math.exp %145 : vector<8x64xf32>
    %cst_32 = arith.constant 1.000000e+00 : f32
    %147 = vector.broadcast %cst_32 : f32 to vector<8x64xf32>
    %148 = arith.addf %147, %146 : vector<8x64xf32>
    %149 = arith.divf %147, %148 : vector<8x64xf32>
    %150 = vector.extract_strided_slice %137 {offsets = [0, 128], sizes = [8, 64], strides = [1, 1]} : vector<8x256xf32> to vector<8x64xf32>
    %151 = math.tanh %150 : vector<8x64xf32>
    %152 = vector.extract_strided_slice %137 {offsets = [0, 192], sizes = [8, 64], strides = [1, 1]} : vector<8x256xf32> to vector<8x64xf32>
    %153 = arith.negf %152 : vector<8x64xf32>
    %154 = math.exp %153 : vector<8x64xf32>
    %cst_33 = arith.constant 1.000000e+00 : f32
    %155 = vector.broadcast %cst_33 : f32 to vector<8x64xf32>
    %156 = arith.addf %155, %154 : vector<8x64xf32>
    %157 = arith.divf %155, %156 : vector<8x64xf32>
    %158 = arith.mulf %149, %132 : vector<8x64xf32>
    %159 = arith.mulf %143, %151 : vector<8x64xf32>
    %160 = arith.addf %158, %159 : vector<8x64xf32>
    %161 = math.tanh %160 : vector<8x64xf32>
    %162 = arith.mulf %157, %161 : vector<8x64xf32>
    %163 = vector.extract_strided_slice %19 {offsets = [40, 0], sizes = [8, 256], strides = [1, 1]} : vector<64x256xf32> to vector<8x256xf32>
    %cst_34 = arith.constant dense<0.000000e+00> : vector<8x256xf32>
    %164 = tpu.matmul %162, %20, %cst_34 {dimension_numbers = #tpu.dot_dimension_numbers<[1], [0], [0], [1], [0, 0, 1, 1], [], []>} : vector<8x64xf32>, vector<64x256xf32>, vector<8x256xf32> -> vector<8x256xf32>
    %165 = arith.addf %163, %164 : vector<8x256xf32>
    %166 = vector.extract_strided_slice %165 {offsets = [0, 0], sizes = [8, 64], strides = [1, 1]} : vector<8x256xf32> to vector<8x64xf32>
    %167 = arith.negf %166 : vector<8x64xf32>
    %168 = math.exp %167 : vector<8x64xf32>
    %cst_35 = arith.constant 1.000000e+00 : f32
    %169 = vector.broadcast %cst_35 : f32 to vector<8x64xf32>
    %170 = arith.addf %169, %168 : vector<8x64xf32>
    %171 = arith.divf %169, %170 : vector<8x64xf32>
    %172 = vector.extract_strided_slice %165 {offsets = [0, 64], sizes = [8, 64], strides = [1, 1]} : vector<8x256xf32> to vector<8x64xf32>
    %173 = arith.negf %172 : vector<8x64xf32>
    %174 = math.exp %173 : vector<8x64xf32>
    %cst_36 = arith.constant 1.000000e+00 : f32
    %175 = vector.broadcast %cst_36 : f32 to vector<8x64xf32>
    %176 = arith.addf %175, %174 : vector<8x64xf32>
    %177 = arith.divf %175, %176 : vector<8x64xf32>
    %178 = vector.extract_strided_slice %165 {offsets = [0, 128], sizes = [8, 64], strides = [1, 1]} : vector<8x256xf32> to vector<8x64xf32>
    %179 = math.tanh %178 : vector<8x64xf32>
    %180 = vector.extract_strided_slice %165 {offsets = [0, 192], sizes = [8, 64], strides = [1, 1]} : vector<8x256xf32> to vector<8x64xf32>
    %181 = arith.negf %180 : vector<8x64xf32>
    %182 = math.exp %181 : vector<8x64xf32>
    %cst_37 = arith.constant 1.000000e+00 : f32
    %183 = vector.broadcast %cst_37 : f32 to vector<8x64xf32>
    %184 = arith.addf %183, %182 : vector<8x64xf32>
    %185 = arith.divf %183, %184 : vector<8x64xf32>
    %186 = arith.mulf %177, %160 : vector<8x64xf32>
    %187 = arith.mulf %171, %179 : vector<8x64xf32>
    %188 = arith.addf %186, %187 : vector<8x64xf32>
    %189 = math.tanh %188 : vector<8x64xf32>
    %190 = arith.mulf %185, %189 : vector<8x64xf32>
    %191 = vector.extract_strided_slice %19 {offsets = [48, 0], sizes = [8, 256], strides = [1, 1]} : vector<64x256xf32> to vector<8x256xf32>
    %cst_38 = arith.constant dense<0.000000e+00> : vector<8x256xf32>
    %192 = tpu.matmul %190, %20, %cst_38 {dimension_numbers = #tpu.dot_dimension_numbers<[1], [0], [0], [1], [0, 0, 1, 1], [], []>} : vector<8x64xf32>, vector<64x256xf32>, vector<8x256xf32> -> vector<8x256xf32>
    %193 = arith.addf %191, %192 : vector<8x256xf32>
    %194 = vector.extract_strided_slice %193 {offsets = [0, 0], sizes = [8, 64], strides = [1, 1]} : vector<8x256xf32> to vector<8x64xf32>
    %195 = arith.negf %194 : vector<8x64xf32>
    %196 = math.exp %195 : vector<8x64xf32>
    %cst_39 = arith.constant 1.000000e+00 : f32
    %197 = vector.broadcast %cst_39 : f32 to vector<8x64xf32>
    %198 = arith.addf %197, %196 : vector<8x64xf32>
    %199 = arith.divf %197, %198 : vector<8x64xf32>
    %200 = vector.extract_strided_slice %193 {offsets = [0, 64], sizes = [8, 64], strides = [1, 1]} : vector<8x256xf32> to vector<8x64xf32>
    %201 = arith.negf %200 : vector<8x64xf32>
    %202 = math.exp %201 : vector<8x64xf32>
    %cst_40 = arith.constant 1.000000e+00 : f32
    %203 = vector.broadcast %cst_40 : f32 to vector<8x64xf32>
    %204 = arith.addf %203, %202 : vector<8x64xf32>
    %205 = arith.divf %203, %204 : vector<8x64xf32>
    %206 = vector.extract_strided_slice %193 {offsets = [0, 128], sizes = [8, 64], strides = [1, 1]} : vector<8x256xf32> to vector<8x64xf32>
    %207 = math.tanh %206 : vector<8x64xf32>
    %208 = vector.extract_strided_slice %193 {offsets = [0, 192], sizes = [8, 64], strides = [1, 1]} : vector<8x256xf32> to vector<8x64xf32>
    %209 = arith.negf %208 : vector<8x64xf32>
    %210 = math.exp %209 : vector<8x64xf32>
    %cst_41 = arith.constant 1.000000e+00 : f32
    %211 = vector.broadcast %cst_41 : f32 to vector<8x64xf32>
    %212 = arith.addf %211, %210 : vector<8x64xf32>
    %213 = arith.divf %211, %212 : vector<8x64xf32>
    %214 = arith.mulf %205, %188 : vector<8x64xf32>
    %215 = arith.mulf %199, %207 : vector<8x64xf32>
    %216 = arith.addf %214, %215 : vector<8x64xf32>
    %217 = math.tanh %216 : vector<8x64xf32>
    %218 = arith.mulf %213, %217 : vector<8x64xf32>
    %219 = vector.extract_strided_slice %19 {offsets = [56, 0], sizes = [8, 256], strides = [1, 1]} : vector<64x256xf32> to vector<8x256xf32>
    %cst_42 = arith.constant dense<0.000000e+00> : vector<8x256xf32>
    %220 = tpu.matmul %218, %20, %cst_42 {dimension_numbers = #tpu.dot_dimension_numbers<[1], [0], [0], [1], [0, 0, 1, 1], [], []>} : vector<8x64xf32>, vector<64x256xf32>, vector<8x256xf32> -> vector<8x256xf32>
    %221 = arith.addf %219, %220 : vector<8x256xf32>
    %222 = vector.extract_strided_slice %221 {offsets = [0, 0], sizes = [8, 64], strides = [1, 1]} : vector<8x256xf32> to vector<8x64xf32>
    %223 = arith.negf %222 : vector<8x64xf32>
    %224 = math.exp %223 : vector<8x64xf32>
    %cst_43 = arith.constant 1.000000e+00 : f32
    %225 = vector.broadcast %cst_43 : f32 to vector<8x64xf32>
    %226 = arith.addf %225, %224 : vector<8x64xf32>
    %227 = arith.divf %225, %226 : vector<8x64xf32>
    %228 = vector.extract_strided_slice %221 {offsets = [0, 64], sizes = [8, 64], strides = [1, 1]} : vector<8x256xf32> to vector<8x64xf32>
    %229 = arith.negf %228 : vector<8x64xf32>
    %230 = math.exp %229 : vector<8x64xf32>
    %cst_44 = arith.constant 1.000000e+00 : f32
    %231 = vector.broadcast %cst_44 : f32 to vector<8x64xf32>
    %232 = arith.addf %231, %230 : vector<8x64xf32>
    %233 = arith.divf %231, %232 : vector<8x64xf32>
    %234 = vector.extract_strided_slice %221 {offsets = [0, 128], sizes = [8, 64], strides = [1, 1]} : vector<8x256xf32> to vector<8x64xf32>
    %235 = math.tanh %234 : vector<8x64xf32>
    %236 = vector.extract_strided_slice %221 {offsets = [0, 192], sizes = [8, 64], strides = [1, 1]} : vector<8x256xf32> to vector<8x64xf32>
    %237 = arith.negf %236 : vector<8x64xf32>
    %238 = math.exp %237 : vector<8x64xf32>
    %cst_45 = arith.constant 1.000000e+00 : f32
    %239 = vector.broadcast %cst_45 : f32 to vector<8x64xf32>
    %240 = arith.addf %239, %238 : vector<8x64xf32>
    %241 = arith.divf %239, %240 : vector<8x64xf32>
    %242 = arith.mulf %233, %216 : vector<8x64xf32>
    %243 = arith.mulf %227, %235 : vector<8x64xf32>
    %244 = arith.addf %242, %243 : vector<8x64xf32>
    %245 = math.tanh %244 : vector<8x64xf32>
    %246 = arith.mulf %241, %245 : vector<8x64xf32>
    %c0_46 = arith.constant 0 : index
    %c0_47 = arith.constant 0 : index
    %247 = vector.load %arg1[%c0_46, %c0_47] : memref<32x2xf32, #tpu.memory_space<vmem>>, vector<32x2xf32>
    %248 = vector.extract_strided_slice %247 {offsets = [0, 0], sizes = [32, 1], strides = [1, 1]} : vector<32x2xf32> to vector<32x1xf32>
    %c0_48 = arith.constant 0 : index
    %c0_49 = arith.constant 0 : index
    %249 = vector.load %arg8[%c0_48, %c0_49] : memref<2x32xf32, #tpu.memory_space<vmem>>, vector<1x32xf32>
    %250 = vector.broadcast %248 : vector<32x1xf32> to vector<32x32xf32>
    %251 = vector.broadcast %249 : vector<1x32xf32> to vector<32x32xf32>
    %252 = arith.mulf %250, %251 : vector<32x32xf32>
    %253 = vector.extract_strided_slice %247 {offsets = [0, 1], sizes = [32, 1], strides = [1, 1]} : vector<32x2xf32> to vector<32x1xf32>
    %c1_50 = arith.constant 1 : index
    %c0_51 = arith.constant 0 : index
    %254 = vector.load %arg8[%c1_50, %c0_51] : memref<2x32xf32, #tpu.memory_space<vmem>>, vector<1x32xf32>
    %255 = vector.broadcast %253 : vector<32x1xf32> to vector<32x32xf32>
    %256 = vector.broadcast %254 : vector<1x32xf32> to vector<32x32xf32>
    %257 = arith.mulf %255, %256 : vector<32x32xf32>
    %258 = arith.addf %252, %257 : vector<32x32xf32>
    %c0_52 = arith.constant 0 : index
    %c0_53 = arith.constant 0 : index
    %259 = vector.load %arg9[%c0_52, %c0_53] : memref<1x32xf32, #tpu.memory_space<vmem>>, vector<1x32xf32>
    %260 = vector.broadcast %259 : vector<1x32xf32> to vector<32x32xf32>
    %261 = arith.addf %258, %260 : vector<32x32xf32>
    %c0_54 = arith.constant 0 : index
    %c0_55 = arith.constant 0 : index
    %262 = vector.load %arg10[%c0_54, %c0_55] : memref<32x128xf32, #tpu.memory_space<vmem>>, vector<32x128xf32>
    %cst_56 = arith.constant dense<0.000000e+00> : vector<32x128xf32>
    %263 = tpu.matmul %261, %262, %cst_56 {dimension_numbers = #tpu.dot_dimension_numbers<[1], [0], [0], [1], [0, 0, 1, 1], [], []>} : vector<32x32xf32>, vector<32x128xf32>, vector<32x128xf32> -> vector<32x128xf32>
    %c0_57 = arith.constant 0 : index
    %c0_58 = arith.constant 0 : index
    %264 = vector.load %arg12[%c0_57, %c0_58] : memref<1x128xf32, #tpu.memory_space<vmem>>, vector<1x128xf32>
    %265 = vector.broadcast %264 : vector<1x128xf32> to vector<32x128xf32>
    %266 = arith.addf %263, %265 : vector<32x128xf32>
    %c0_59 = arith.constant 0 : index
    %c0_60 = arith.constant 0 : index
    %267 = vector.load %arg11[%c0_59, %c0_60] : memref<64x128xf32, #tpu.memory_space<vmem>>, vector<64x128xf32>
    %cst_61 = arith.constant dense<0.000000e+00> : vector<8x128xf32>
    %268 = tpu.matmul %246, %267, %cst_61 {dimension_numbers = #tpu.dot_dimension_numbers<[1], [0], [0], [1], [0, 0, 1, 1], [], []>} : vector<8x64xf32>, vector<64x128xf32>, vector<8x128xf32> -> vector<8x128xf32>
    %c0_62 = arith.constant 0 : index
    %c0_63 = arith.constant 0 : index
    %269 = vector.load %arg13[%c0_62, %c0_63] : memref<128x64xf32, #tpu.memory_space<vmem>>, vector<128x64xf32>
    %c0_64 = arith.constant 0 : index
    %c0_65 = arith.constant 0 : index
    %270 = vector.load %arg14[%c0_64, %c0_65] : memref<1x64xf32, #tpu.memory_space<vmem>>, vector<1x64xf32>
    %271 = vector.extract_strided_slice %268 {offsets = [0, 0], sizes = [1, 128], strides = [1, 1]} : vector<8x128xf32> to vector<1x128xf32>
    %272 = vector.shape_cast %271 : vector<1x128xf32> to vector<1x128xf32>
    %273 = vector.broadcast %272 : vector<1x128xf32> to vector<4x128xf32>
    %274 = vector.extract_strided_slice %268 {offsets = [4, 0], sizes = [1, 128], strides = [1, 1]} : vector<8x128xf32> to vector<1x128xf32>
    %275 = vector.shape_cast %274 : vector<1x128xf32> to vector<1x128xf32>
    %276 = vector.broadcast %275 : vector<1x128xf32> to vector<4x128xf32>
    %277 = tpu.concatenate %273, %276 in 0 : vector<4x128xf32>, vector<4x128xf32> -> vector<8x128xf32>
    %278 = vector.extract_strided_slice %266 {offsets = [0, 0], sizes = [8, 128], strides = [1, 1]} : vector<32x128xf32> to vector<8x128xf32>
    %279 = arith.addf %278, %277 : vector<8x128xf32>
    %cst_66 = arith.constant 0.000000e+00 : f32
    %280 = vector.broadcast %cst_66 : f32 to vector<8x128xf32>
    %281 = arith.maximumf %279, %280 : vector<8x128xf32>
    %cst_67 = arith.constant dense<0.000000e+00> : vector<8x64xf32>
    %282 = tpu.matmul %281, %269, %cst_67 {dimension_numbers = #tpu.dot_dimension_numbers<[1], [0], [0], [1], [0, 0, 1, 1], [], []>} : vector<8x128xf32>, vector<128x64xf32>, vector<8x64xf32> -> vector<8x64xf32>
    %283 = vector.broadcast %270 : vector<1x64xf32> to vector<8x64xf32>
    %284 = arith.addf %282, %283 : vector<8x64xf32>
    %cst_68 = arith.constant 0.000000e+00 : f32
    %285 = vector.broadcast %cst_68 : f32 to vector<8x64xf32>
    %286 = arith.maximumf %284, %285 : vector<8x64xf32>
    %287 = vector.extract_strided_slice %268 {offsets = [1, 0], sizes = [1, 128], strides = [1, 1]} : vector<8x128xf32> to vector<1x128xf32>
    %288 = vector.shape_cast %287 : vector<1x128xf32> to vector<1x128xf32>
    %289 = vector.broadcast %288 : vector<1x128xf32> to vector<4x128xf32>
    %290 = vector.extract_strided_slice %268 {offsets = [5, 0], sizes = [1, 128], strides = [1, 1]} : vector<8x128xf32> to vector<1x128xf32>
    %291 = vector.shape_cast %290 : vector<1x128xf32> to vector<1x128xf32>
    %292 = vector.broadcast %291 : vector<1x128xf32> to vector<4x128xf32>
    %293 = tpu.concatenate %289, %292 in 0 : vector<4x128xf32>, vector<4x128xf32> -> vector<8x128xf32>
    %294 = vector.extract_strided_slice %266 {offsets = [8, 0], sizes = [8, 128], strides = [1, 1]} : vector<32x128xf32> to vector<8x128xf32>
    %295 = arith.addf %294, %293 : vector<8x128xf32>
    %cst_69 = arith.constant 0.000000e+00 : f32
    %296 = vector.broadcast %cst_69 : f32 to vector<8x128xf32>
    %297 = arith.maximumf %295, %296 : vector<8x128xf32>
    %cst_70 = arith.constant dense<0.000000e+00> : vector<8x64xf32>
    %298 = tpu.matmul %297, %269, %cst_70 {dimension_numbers = #tpu.dot_dimension_numbers<[1], [0], [0], [1], [0, 0, 1, 1], [], []>} : vector<8x128xf32>, vector<128x64xf32>, vector<8x64xf32> -> vector<8x64xf32>
    %299 = vector.broadcast %270 : vector<1x64xf32> to vector<8x64xf32>
    %300 = arith.addf %298, %299 : vector<8x64xf32>
    %cst_71 = arith.constant 0.000000e+00 : f32
    %301 = vector.broadcast %cst_71 : f32 to vector<8x64xf32>
    %302 = arith.maximumf %300, %301 : vector<8x64xf32>
    %303 = arith.maximumf %286, %302 : vector<8x64xf32>
    %304 = vector.extract_strided_slice %268 {offsets = [2, 0], sizes = [1, 128], strides = [1, 1]} : vector<8x128xf32> to vector<1x128xf32>
    %305 = vector.shape_cast %304 : vector<1x128xf32> to vector<1x128xf32>
    %306 = vector.broadcast %305 : vector<1x128xf32> to vector<4x128xf32>
    %307 = vector.extract_strided_slice %268 {offsets = [6, 0], sizes = [1, 128], strides = [1, 1]} : vector<8x128xf32> to vector<1x128xf32>
    %308 = vector.shape_cast %307 : vector<1x128xf32> to vector<1x128xf32>
    %309 = vector.broadcast %308 : vector<1x128xf32> to vector<4x128xf32>
    %310 = tpu.concatenate %306, %309 in 0 : vector<4x128xf32>, vector<4x128xf32> -> vector<8x128xf32>
    %311 = vector.extract_strided_slice %266 {offsets = [16, 0], sizes = [8, 128], strides = [1, 1]} : vector<32x128xf32> to vector<8x128xf32>
    %312 = arith.addf %311, %310 : vector<8x128xf32>
    %cst_72 = arith.constant 0.000000e+00 : f32
    %313 = vector.broadcast %cst_72 : f32 to vector<8x128xf32>
    %314 = arith.maximumf %312, %313 : vector<8x128xf32>
    %cst_73 = arith.constant dense<0.000000e+00> : vector<8x64xf32>
    %315 = tpu.matmul %314, %269, %cst_73 {dimension_numbers = #tpu.dot_dimension_numbers<[1], [0], [0], [1], [0, 0, 1, 1], [], []>} : vector<8x128xf32>, vector<128x64xf32>, vector<8x64xf32> -> vector<8x64xf32>
    %316 = vector.broadcast %270 : vector<1x64xf32> to vector<8x64xf32>
    %317 = arith.addf %315, %316 : vector<8x64xf32>
    %cst_74 = arith.constant 0.000000e+00 : f32
    %318 = vector.broadcast %cst_74 : f32 to vector<8x64xf32>
    %319 = arith.maximumf %317, %318 : vector<8x64xf32>
    %320 = arith.maximumf %303, %319 : vector<8x64xf32>
    %321 = vector.extract_strided_slice %268 {offsets = [3, 0], sizes = [1, 128], strides = [1, 1]} : vector<8x128xf32> to vector<1x128xf32>
    %322 = vector.shape_cast %321 : vector<1x128xf32> to vector<1x128xf32>
    %323 = vector.broadcast %322 : vector<1x128xf32> to vector<4x128xf32>
    %324 = vector.extract_strided_slice %268 {offsets = [7, 0], sizes = [1, 128], strides = [1, 1]} : vector<8x128xf32> to vector<1x128xf32>
    %325 = vector.shape_cast %324 : vector<1x128xf32> to vector<1x128xf32>
    %326 = vector.broadcast %325 : vector<1x128xf32> to vector<4x128xf32>
    %327 = tpu.concatenate %323, %326 in 0 : vector<4x128xf32>, vector<4x128xf32> -> vector<8x128xf32>
    %328 = vector.extract_strided_slice %266 {offsets = [24, 0], sizes = [8, 128], strides = [1, 1]} : vector<32x128xf32> to vector<8x128xf32>
    %329 = arith.addf %328, %327 : vector<8x128xf32>
    %cst_75 = arith.constant 0.000000e+00 : f32
    %330 = vector.broadcast %cst_75 : f32 to vector<8x128xf32>
    %331 = arith.maximumf %329, %330 : vector<8x128xf32>
    %cst_76 = arith.constant dense<0.000000e+00> : vector<8x64xf32>
    %332 = tpu.matmul %331, %269, %cst_76 {dimension_numbers = #tpu.dot_dimension_numbers<[1], [0], [0], [1], [0, 0, 1, 1], [], []>} : vector<8x128xf32>, vector<128x64xf32>, vector<8x64xf32> -> vector<8x64xf32>
    %333 = vector.broadcast %270 : vector<1x64xf32> to vector<8x64xf32>
    %334 = arith.addf %332, %333 : vector<8x64xf32>
    %cst_77 = arith.constant 0.000000e+00 : f32
    %335 = vector.broadcast %cst_77 : f32 to vector<8x64xf32>
    %336 = arith.maximumf %334, %335 : vector<8x64xf32>
    %337 = arith.maximumf %320, %336 : vector<8x64xf32>
    %338 = vector.extract_strided_slice %246 {offsets = [0, 0], sizes = [1, 64], strides = [1, 1]} : vector<8x64xf32> to vector<1x64xf32>
    %339 = vector.extract_strided_slice %246 {offsets = [4, 0], sizes = [1, 64], strides = [1, 1]} : vector<8x64xf32> to vector<1x64xf32>
    %340 = tpu.concatenate %338, %339 in 0 : vector<1x64xf32>, vector<1x64xf32> -> vector<2x64xf32>
    %341 = vector.extract_strided_slice %337 {offsets = [0, 0], sizes = [1, 64], strides = [1, 1]} : vector<8x64xf32> to vector<1x64xf32>
    %342 = vector.extract_strided_slice %337 {offsets = [4, 0], sizes = [1, 64], strides = [1, 1]} : vector<8x64xf32> to vector<1x64xf32>
    %343 = tpu.concatenate %341, %342 in 0 : vector<1x64xf32>, vector<1x64xf32> -> vector<2x64xf32>
    %c0_78 = arith.constant 0 : index
    %c0_79 = arith.constant 0 : index
    %344 = vector.load %arg15[%c0_78, %c0_79] : memref<64x64xf32, #tpu.memory_space<vmem>>, vector<64x64xf32>
    %cst_80 = arith.constant dense<0.000000e+00> : vector<2x64xf32>
    %345 = tpu.matmul %340, %344, %cst_80 {dimension_numbers = #tpu.dot_dimension_numbers<[1], [0], [0], [1], [0, 0, 1, 1], [], []>} : vector<2x64xf32>, vector<64x64xf32>, vector<2x64xf32> -> vector<2x64xf32>
    %c0_81 = arith.constant 0 : index
    %c0_82 = arith.constant 0 : index
    %346 = vector.load %arg16[%c0_81, %c0_82] : memref<64x64xf32, #tpu.memory_space<vmem>>, vector<64x64xf32>
    %cst_83 = arith.constant dense<0.000000e+00> : vector<2x64xf32>
    %347 = tpu.matmul %343, %346, %cst_83 {dimension_numbers = #tpu.dot_dimension_numbers<[1], [0], [0], [1], [0, 0, 1, 1], [], []>} : vector<2x64xf32>, vector<64x64xf32>, vector<2x64xf32> -> vector<2x64xf32>
    %348 = arith.addf %345, %347 : vector<2x64xf32>
    %c0_84 = arith.constant 0 : index
    %c0_85 = arith.constant 0 : index
    %349 = vector.load %arg2[%c0_84, %c0_85] : memref<2x8xf32, #tpu.memory_space<vmem>>, vector<2x8xf32>
    %c0_86 = arith.constant 0 : index
    %c0_87 = arith.constant 0 : index
    %350 = vector.load %arg17[%c0_86, %c0_87] : memref<8x64xf32, #tpu.memory_space<vmem>>, vector<8x64xf32>
    %cst_88 = arith.constant dense<0.000000e+00> : vector<2x64xf32>
    %351 = tpu.matmul %349, %350, %cst_88 {dimension_numbers = #tpu.dot_dimension_numbers<[1], [0], [0], [1], [0, 0, 1, 1], [], []>} : vector<2x8xf32>, vector<8x64xf32>, vector<2x64xf32> -> vector<2x64xf32>
    %352 = arith.addf %348, %351 : vector<2x64xf32>
    %c0_89 = arith.constant 0 : index
    %c0_90 = arith.constant 0 : index
    %353 = vector.load %arg18[%c0_89, %c0_90] : memref<1x64xf32, #tpu.memory_space<vmem>>, vector<1x64xf32>
    %354 = vector.broadcast %353 : vector<1x64xf32> to vector<2x64xf32>
    %355 = arith.addf %352, %354 : vector<2x64xf32>
    %cst_91 = arith.constant 0.000000e+00 : f32
    %356 = vector.broadcast %cst_91 : f32 to vector<2x64xf32>
    %357 = arith.maximumf %355, %356 : vector<2x64xf32>
    %c0_92 = arith.constant 0 : index
    %c0_93 = arith.constant 0 : index
    %358 = vector.load %arg19[%c0_92, %c0_93] : memref<64x32xf32, #tpu.memory_space<vmem>>, vector<64x32xf32>
    %cst_94 = arith.constant dense<0.000000e+00> : vector<2x32xf32>
    %359 = tpu.matmul %357, %358, %cst_94 {dimension_numbers = #tpu.dot_dimension_numbers<[1], [0], [0], [1], [0, 0, 1, 1], [], []>} : vector<2x64xf32>, vector<64x32xf32>, vector<2x32xf32> -> vector<2x32xf32>
    %c0_95 = arith.constant 0 : index
    %c0_96 = arith.constant 0 : index
    %360 = vector.load %arg20[%c0_95, %c0_96] : memref<1x32xf32, #tpu.memory_space<vmem>>, vector<1x32xf32>
    %361 = vector.broadcast %360 : vector<1x32xf32> to vector<2x32xf32>
    %362 = arith.addf %359, %361 : vector<2x32xf32>
    %cst_97 = arith.constant 0.000000e+00 : f32
    %363 = vector.broadcast %cst_97 : f32 to vector<2x32xf32>
    %364 = arith.maximumf %362, %363 : vector<2x32xf32>
    %c0_98 = arith.constant 0 : index
    %c0_99 = arith.constant 0 : index
    %365 = vector.load %arg21[%c0_98, %c0_99] : memref<32x16xf32, #tpu.memory_space<vmem>>, vector<32x16xf32>
    %cst_100 = arith.constant dense<0.000000e+00> : vector<2x16xf32>
    %366 = tpu.matmul %364, %365, %cst_100 {dimension_numbers = #tpu.dot_dimension_numbers<[1], [0], [0], [1], [0, 0, 1, 1], [], []>} : vector<2x32xf32>, vector<32x16xf32>, vector<2x16xf32> -> vector<2x16xf32>
    %c0_101 = arith.constant 0 : index
    %c0_102 = arith.constant 0 : index
    %367 = vector.load %arg22[%c0_101, %c0_102] : memref<1x16xf32, #tpu.memory_space<vmem>>, vector<1x16xf32>
    %368 = vector.broadcast %367 : vector<1x16xf32> to vector<2x16xf32>
    %369 = arith.addf %366, %368 : vector<2x16xf32>
    %cst_103 = arith.constant 0.000000e+00 : f32
    %370 = vector.broadcast %cst_103 : f32 to vector<2x16xf32>
    %371 = arith.maximumf %369, %370 : vector<2x16xf32>
    %c0_104 = arith.constant 0 : index
    %c0_105 = arith.constant 0 : index
    %372 = vector.load %arg23[%c0_104, %c0_105] : memref<16x2xf32, #tpu.memory_space<vmem>>, vector<16x2xf32>
    %cst_106 = arith.constant dense<0.000000e+00> : vector<2x2xf32>
    %373 = tpu.matmul %371, %372, %cst_106 {dimension_numbers = #tpu.dot_dimension_numbers<[1], [0], [0], [1], [0, 0, 1, 1], [], []>} : vector<2x16xf32>, vector<16x2xf32>, vector<2x2xf32> -> vector<2x2xf32>
    %c0_107 = arith.constant 0 : index
    %c0_108 = arith.constant 0 : index
    %374 = vector.load %arg24[%c0_107, %c0_108] : memref<1x2xf32, #tpu.memory_space<vmem>>, vector<1x2xf32>
    %375 = vector.broadcast %374 : vector<1x2xf32> to vector<2x2xf32>
    %376 = arith.addf %373, %375 : vector<2x2xf32>
    %c0_109 = arith.constant 0 : index
    %c0_110 = arith.constant 0 : index
    %377 = vector.load %arg25[%c0_109, %c0_110] : memref<2x2xf32, #tpu.memory_space<vmem>>, vector<2x2xf32>
    tpu.vector_store %arg25[%c0_109, %c0_110], %376 {strides = array<i32>} : memref<2x2xf32, #tpu.memory_space<vmem>>, vector<2x2xf32>,
    return
  }
}

</mosaic_0001>

<bundles_post_ra>
// kernel: value_network_forward.1
= control target key start
LH: loop header
LB: loop body
LE: loop exit
PB: predicated region body
PF: predicated region fallthrough
CT: control target
= control target key end

     0   :  { %s4051_s0 = inlined_call_operand.vmem [shape: f32[64,2], index: 0, kind: input, shape index: {}]   ;;  %s4052_s1 = inlined_call_operand.vmem [shape: f32[32,2], index: 1, kind: input, shape index: {}]   ;;  %s4053_s2 = inlined_call_operand.vmem [shape: f32[2,8], index: 2, kind: input, shape index: {}]   ;;  %s4054_s3 = inlined_call_operand.vmem [shape: f32[2,32], index: 3, kind: input, shape index: {}]   ;;  %s4055_s4 = inlined_call_operand.vmem [shape: f32[1,32], index: 4, kind: input, shape index: {}]   ;;  %s4056_s5 = inlined_call_operand.vmem [shape: f32[32,256], index: 5, kind: input, shape index: {}]   ;;  %s4057_s6 = inlined_call_operand.vmem [shape: f32[64,256], index: 6, kind: input, shape index: {}]   ;;  %s4058_s7 = inlined_call_operand.vmem [shape: f32[1,256], index: 7, kind: input, shape index: {}]   ;;  %s4059_s8 = inlined_call_operand.vmem [shape: f32[2,32], index: 8, kind: input, shape index: {}]   ;;  %s4060_s9 = inlined_call_operand.vmem [shape: f32[1,32], index: 9, kind: input, shape index: {}]   ;;  %s4061_s10 = inlined_call_operand.vmem [shape: f32[32,128], index: 10, kind: input, shape index: {}]   ;;  %s4062_s11 = inlined_call_operand.vmem [shape: f32[64,128], index: 11, kind: input, shape index: {}]   ;;  %s4063_s12 = inlined_call_operand.vmem [shape: f32[1,128], index: 12, kind: input, shape index: {}]   ;;  %s4064_s13 = inlined_call_operand.vmem [shape: f32[128,64], index: 13, kind: input, shape index: {}]   ;;  %s4065_s14 = inlined_call_operand.vmem [shape: f32[1,64], index: 14, kind: input, shape index: {}]   ;;  %s4066_s15 = inlined_call_operand.vmem [shape: f32[64,64], index: 15, kind: input, shape index: {}]   ;;  %s4067_s16 = inlined_call_operand.vmem [shape: f32[64,64], index: 16, kind: input, shape index: {}]   ;;  %s4068_s17 = inlined_call_operand.vmem [shape: f32[8,64], index: 17, kind: input, shape index: {}]   ;;  %s4069_s18 = inlined_call_operand.vmem [shape: f32[1,64], index: 18, kind: input, shape index: {}]   ;;  %s4070_s19 = inlined_call_operand.vmem [shape: f32[64,32], index: 19, kind: input, shape index: {}]   ;;  %s4071_s20 = inlined_call_operand.vmem [shape: f32[1,32], index: 20, kind: input, shape index: {}]   ;;  %s4072_s21 = inlined_call_operand.vmem [shape: f32[32,16], index: 21, kind: input, shape index: {}]   ;;  %s4073_s22 = inlined_call_operand.vmem [shape: f32[1,16], index: 22, kind: input, shape index: {}]   ;;  %s4074_s23 = inlined_call_operand.vmem [shape: f32[16,2], index: 23, kind: input, shape index: {}]   ;;  %s4075_s24 = inlined_call_operand.vmem [shape: f32[1,2], index: 24, kind: input, shape index: {}]   ;;  %s4076_s25 = inlined_call_operand.hbm [shape: f32[2,2], index: 25, kind: output, shape index: {}]  }
   0x1   :  { %4083 = sst [smem:[#allocation5_spill]] %s4051_s0 }
   0x2   :  { %4084 = sst [smem:[#allocation6_spill]] %s4052_s1 }
   0x3   :  { %4085 = sst [smem:[#allocation7_spill]] %s4053_s2 }
   0x4   :  { %4086 = sst [smem:[#allocation8_spill]] %s4054_s3 }
   0x5   :  { %4087 = sst [smem:[#allocation9_spill]] %s4055_s4 }
   0x6   :  { %4088 = sst [smem:[#allocation10_spill]] %s4056_s5 }
   0x7   :  { %4089 = sst [smem:[#allocation11_spill]] %s4057_s6 }
   0x8   :  { %4090 = sst [smem:[#allocation12_spill]] %s4058_s7 }
   0x9   :  { %4091 = sst [smem:[#allocation13_spill]] %s4059_s8 }
   0xa   :  { %4092 = sst [smem:[#allocation14_spill]] %s4060_s9 }
   0xb   :  { %s4093_s6 = sld [smem:[#allocation5_spill]]  ;;  %v3230_v2 = vmov 0   ;;  %s4094_s1 = sld [smem:[#allocation10_spill]] }
   0xc   :  { %3100 = vset.pattern.permute.xlu1 %v3230_v2  ;;  %3098 = vset.pattern.permute.xlu0 %v3230_v2 }
  0x11   :  { %v82_v0 = vld [vmem:[%s4093_s6 + $0x8] sm:$0xff]  ;;  %v81_v1 = vld [vmem:[%s4093_s6] sm:$0xff]  ;;  %v213_v4 = vld [vmem:[%s4094_s1 + $0x18] sm:$0xff] }
  0x12   :  { %97 = vperm.xlu1 %3100, %v82_v0   ;;  %92 = vperm.xlu0 %3098, %v81_v1   ;;  %v211_v3 = vld [vmem:[%s4094_s1 + $0x8] sm:$0xff]  ;;  %v210_v5 = vld [vmem:[%s4094_s1] sm:$0xff]  ;;  %v212_v7 = vld [vmem:[%s4094_s1 + $0x10] sm:$0xff] }
  0x13   :  { %v2762_v6 = vpack.c.bf16 %v213_v4, %v211_v3  ;;  %v2764_v8 = vpack.c.bf16 %v212_v7, %v210_v5 }
  0x14   :  { %30 = vsyncpa [#allocation3], 0  ;;  %v3231_v9 = vmov 1   ;;  %v215_v10 = vld [vmem:[%s4094_s1 + $0x28] sm:$0xff]  ;;  %v217_v11 = vld [vmem:[%s4094_s1 + $0x38] sm:$0xff]  ;;  %v3232_v18 = vmov 0.0  }
  0x15   :  { %v2766_v12 = vpack.c.bf16 %v217_v11, %v215_v10  ;;  %v214_v13 = vld [vmem:[%s4094_s1 + $0x20] sm:$0xff]  ;;  %v216_v14 = vld [vmem:[%s4094_s1 + $0x30] sm:$0xff]  ;;  %2763 = vmatprep.subr.bf16.mxu0 %v2762_v6  ;;  %v84_v17 = vld [vmem:[%s4093_s6 + $0x18] sm:$0xff]  ;;  %319 = vmatprep.mubr.f32.mxu0 %v3232_v18  ;;  %s4095_s2 = sld [smem:[#allocation11_spill]]  ;;  %s4096_s5 = sld [smem:[#allocation8_spill]]  ;;  %vm230_vm0 = vcmask 261120  }
  0x16   :  { %3101 = vset.pattern.permute.xlu1 %v3231_v9  ;;  %3099 = vset.pattern.permute.xlu0 %v3231_v9  ;;  %v83_v15 = vld [vmem:[%s4093_s6 + $0x10] sm:$0xff]  ;;  %v2768_v16 = vpack.c.bf16 %v216_v14, %v214_v13  ;;  %v85_v19 = vld [vmem:[%s4093_s6 + $0x20] sm:$0xff]  ;;  %v86_v23 = vld [vmem:[%s4093_s6 + $0x28] sm:$0xff]  ;;  %s4097_s27 = sld [smem:[#allocation9_spill]]  ;;  %s4098_s26 = sld [smem:[#allocation12_spill]]  ;;  %vm384_vm1 = vcmask 523264  }
  0x17   :  { %148 = vperm.xlu1 %3101, %v82_v0   ;;  %144 = vperm.xlu0 %3099, %v81_v1   ;;  %v87_v24 = vld [vmem:[%s4093_s6 + $0x30] sm:$0xff]  ;;  %v88_v25 = vld [vmem:[%s4093_s6 + $0x38] sm:$0xff]  ;;  %s3233_s8 = smov 64   ;;  %s4099_s28 = sld [smem:[#allocation6_spill]]  ;;  %vm3235_vm2 = vmmov 0   ;;  %vm1804_vm3 = vcmask 1040384  }
  0x18   :  { %2765 = vmatpush1.bf16.msra.mxu0 %v2764_v8  ;;  %s4100_s1 = sld [smem:[#allocation13_spill]]  ;;  %s4101_s30 = sld [smem:[#allocation14_spill]]  ;;  %vm1472_vm4 = vcmask 1043456   ;;  %vm1976_vm5 = vcmask 64512   ;;  %vm2243_vm6 = vcmask 130048   ;;  %vm2317_vm7 = vcmask 9216  }
  0x19   :  { %2767 = vmatprep.subr.bf16.mxu0 %v2766_v12  ;;  %s3236_s3 = smov [#allocation2]  }
  0x1b   :  { %3102 = vset.pattern.permute.xlu1 %v3230_v2  ;;  %152 = vperm.xlu0 %3099, %v83_v15   ;;  %v369_v20 = vld [vmem:[%s4095_s2 + $0x8] sm:$0xff]  ;;  %v371_v21 = vld [vmem:[%s4095_s2 + $0x18] sm:$0xff]  ;;  %v3435_v28 = vld [vmem:[%s4096_s5] ss:$0 sm:$0xff] }
  0x1c   :  { %102 = vperm.xlu1 %3102, %v83_v15   ;;  %2769 = vmatpush1.bf16.msra.mxu0 %v2768_v16  ;;  %v3418_v22 = vpack.c.bf16 %v371_v21, %v369_v20  ;;  %v3440_v29 = vld [vmem:[%s4096_s5 + $0x1] ss:$0 sm:$0xff]  ;;  %v370_v36 = vld [vmem:[%s4095_s2 + $0x10] sm:$0xff]  ;;  %v3454_v37 = vld [vmem:[%s4097_s27] ss:$0 sm:$0xff] }
  0x1d   :  { %v368_v35 = vld [vmem:[%s4095_s2] sm:$0xff]  ;;  %v373_v38 = vld [vmem:[%s4095_s2 + $0x28] sm:$0xff]  ;;  %v375_v39 = vld [vmem:[%s4095_s2 + $0x38] sm:$0xff] }
  0x1e   :  { %2771 = vmatprep.subr.bf16.mxu0 %v3418_v22  ;;  %v3463_v43 = vpack.c.bf16 %v370_v36, %v368_v35  ;;  %v3467_v48 = vpack.c.bf16 %v375_v39, %v373_v38  ;;  %v372_v49 = vld [vmem:[%s4095_s2 + $0x20] sm:$0xff]  ;;  %v374_v50 = vld [vmem:[%s4095_s2 + $0x30] sm:$0xff]  ;;  %v377_v52 = vld [vmem:[%s4095_s2 + $0x48] sm:$0xff] }
  0x1f   :  { %156 = vperm.xlu0 %3099, %v84_v17   ;;  %v379_v53 = vld [vmem:[%s4095_s2 + $0x58] sm:$0xff]  ;;  %v3485_v55 = vpack.c.bf16 %v374_v50, %v372_v49  ;;  %v376_v61 = vld [vmem:[%s4095_s2 + $0x40] sm:$0xff]  ;;  %v378_v62 = vld [vmem:[%s4095_s2 + $0x50] sm:$0xff] }
  0x20   :  { %107 = vperm.xlu1 %3102, %v84_v17   ;;  %v3490_v60 = vpack.c.bf16 %v379_v53, %v377_v52  ;;  %v381_v0 = vld [vmem:[%s4095_s2 + $0x68] sm:$0xff]  ;;  %v383_v1 = vld [vmem:[%s4095_s2 + $0x78] sm:$0xff]  ;;  %v3508_v4 = vpack.c.bf16 %v378_v62, %v376_v61  ;;  %v380_v11 = vld [vmem:[%s4095_s2 + $0x60] sm:$0xff] }
  0x21   :  { %v3513_v10 = vpack.c.bf16 %v383_v1, %v381_v0  ;;  %v382_v12 = vld [vmem:[%s4095_s2 + $0x70] sm:$0xff] }
  0x22   :  { %v3525_v15 = vpack.c.bf16 %v382_v12, %v380_v11 }
  0x23   :  { %160 = vperm.xlu0 %3099, %v85_v19  }
  0x24   :  { %112 = vperm.xlu1 %3102, %v85_v19  }
  0x27   :  { %164 = vperm.xlu0 %3099, %v86_v23  }
  0x28   :  { %117 = vperm.xlu1 %3102, %v86_v23  }
  0x2b   :  { %168 = vperm.xlu0 %3099, %v87_v24  }
  0x2c   :  { %122 = vperm.xlu1 %3102, %v87_v24  }
  0x2f   :  { %172 = vperm.xlu0 %3099, %v88_v25  }
  0x30   :  { %127 = vperm.xlu1 %3102, %v88_v25  }
  0x33   :  { %3103 = vset.pattern.permute.xlu0 %v3230_v2 }
  0x34   :  { %3104 = vset.pattern.permute.xlu1 %v3231_v9 }
  0x91   :  { %v93_v26 = vpop.permute.xlu0 %92  ;;  %v98_v27 = vpop.permute.xlu1 %97 }
  0x92   :  { %v134_v32 = vmul.f32 %v3435_v28, %v93_v26  ;;  %v135_v40 = vmul.f32 %v3435_v28, %v98_v27 }
  0x96   :  { %v149_v30 = vpop.permute.xlu1 %148  ;;  %v145_v31 = vpop.permute.xlu0 %144 }
  0x97   :  { %v180_v33 = vmul.f32 %v3440_v29, %v149_v30  ;;  %v179_v34 = vmul.f32 %v3440_v29, %v145_v31 }
  0x99   :  { %v187_v41 = vadd.f32 %v179_v34, %v134_v32  ;;  %v188_v44 = vadd.f32 %v180_v33, %v135_v40 }
  0x9a   :  { %v153_v42 = vpop.permute.xlu0 %152 }
  0x9b   :  { %v202_v45 = vadd.f32 %v3454_v37, %v187_v41  ;;  %v181_v46 = vmul.f32 %v3440_v29, %v153_v42  ;;  %v103_v47 = vpop.permute.xlu1 %102  ;;  %v203_v56 = vadd.f32 %v3454_v37, %v188_v44  ;;  %v218_v41 = vld [vmem:[%s4098_s26] sm:$0x3]  ;;  %s2325_s26 = sshll.u32 %s3236_s3, 4  ;;  %s2326_s26 = int_to_ptr.vmem [resolvable:$true] %s2325_s26 }
  0x9c   :  { %v136_v51 = vmul.f32 %v3435_v28, %v103_v47  ;;  %p3211_p1 = scmp.lt.s32.totalorder %s2326_s26, %s2326_s26 }
  0x9d   :  { %2336 = vmatmul.mubr.msk.f32.vlgmr.msra.gmra.mrb[0].mxu0 %vm230_vm0, %v202_v45 }
  0x9e   :  { %2773 = vmatpush1.bf16.msra.mxu0 %v3463_v43  ;;  %v157_v54 = vpop.permute.xlu0 %156  ;;  %325 = vmatprep.mubr.f32.mxu0 %v3232_v18  ;;  %v189_v57 = vadd.f32 %v181_v46, %v136_v51 }
  0x9f   :  { %v182_v58 = vmul.f32 %v3440_v29, %v157_v54  ;;  %v108_v59 = vpop.permute.xlu1 %107  ;;  %2775 = vmatprep.subr.bf16.mxu0 %v3467_v48 }
  0xa0   :  { %v137_v63 = vmul.f32 %v3435_v28, %v108_v59  ;;  %v204_v5 = vadd.f32 %v3454_v37, %v189_v57 }
  0xa1   :  { %2337 = vmatmul.mubr.msk.f32.gmra.mrb[2].mxu0 %vm230_vm0, %v203_v56 }
  0xa2   :  { %v161_v3 = vpop.permute.xlu0 %160  ;;  %331 = vmatprep.mubr.f32.mxu0 %v3232_v18  ;;  %2777 = vmatpush1.bf16.msra.mxu0 %v3485_v55  ;;  %v190_v6 = vadd.f32 %v182_v58, %v137_v63 }
  0xa3   :  { %v183_v7 = vmul.f32 %v3440_v29, %v161_v3  ;;  %v113_v8 = vpop.permute.xlu1 %112  ;;  %2779 = vmatprep.subr.bf16.mxu0 %v3490_v60 }
  0xa4   :  { %v138_v13 = vmul.f32 %v3435_v28, %v113_v8  ;;  %v205_v16 = vadd.f32 %v3454_v37, %v190_v6 }
  0xa5   :  { %2338 = vmatmul.mubr.msk.f32.gmra.mrb[4].mxu0 %vm230_vm0, %v204_v5 }
  0xa6   :  { %v165_v14 = vpop.permute.xlu0 %164  ;;  %337 = vmatprep.mubr.f32.mxu0 %v3232_v18  ;;  %2781 = vmatpush1.bf16.msra.mxu0 %v3508_v4  ;;  %v191_v17 = vadd.f32 %v183_v7, %v138_v13 }
  0xa7   :  { %v184_v19 = vmul.f32 %v3440_v29, %v165_v14  ;;  %v118_v20 = vpop.permute.xlu1 %117  ;;  %2783 = vmatprep.subr.bf16.mxu0 %v3513_v10 }
  0xa8   :  { %v139_v21 = vmul.f32 %v3435_v28, %v118_v20  ;;  %v206_v24 = vadd.f32 %v3454_v37, %v191_v17 }
  0xa9   :  { %2339 = vmatmul.mubr.msk.f32.gmra.mrb[6].mxu0 %vm230_vm0, %v205_v16 }
  0xaa   :  { %v169_v23 = vpop.permute.xlu0 %168  ;;  %343 = vmatprep.mubr.f32.mxu0 %v3232_v18  ;;  %2785 = vmatpush1.bf16.msra.mxu0 %v3525_v15  ;;  %v192_v25 = vadd.f32 %v184_v19, %v139_v21 }
  0xab   :  { %v185_v26 = vmul.f32 %v3440_v29, %v169_v23  ;;  %v123_v27 = vpop.permute.xlu1 %122  ;;  %2787 = vmatprep.subr.bf16.mxu0 %v3418_v22 }
  0xac   :  { %v140_v30 = vmul.f32 %v3435_v28, %v123_v27  ;;  %v207_v32 = vadd.f32 %v3454_v37, %v192_v25 }
  0xad   :  { %2340 = vmatmul.mubr.msk.f32.gmra.mrb[8].mxu0 %vm230_vm0, %v206_v24 }
  0xae   :  { %v173_v31 = vpop.permute.xlu0 %172  ;;  %349 = vmatprep.mubr.f32.mxu0 %v3232_v18  ;;  %v193_v33 = vadd.f32 %v185_v26, %v140_v30 }
  0xaf   :  { %v186_v34 = vmul.f32 %v3440_v29, %v173_v31  ;;  %v128_v35 = vpop.permute.xlu1 %127 }
  0xb0   :  { %v141_v36 = vmul.f32 %v3435_v28, %v128_v35  ;;  %v208_v38 = vadd.f32 %v3454_v37, %v193_v33  ;;  %v220_v28 = vlaneseq }
  0xb1   :  { %2341 = vmatmul.mubr.msk.f32.gmra.mrb[10].mxu0 %vm230_vm0, %v207_v32 }
  0xb2   :  { %355 = vmatprep.mubr.f32.mxu0 %v3232_v18  ;;  %v194_v39 = vadd.f32 %v186_v34, %v141_v36  ;;  %v3561_v29 = vshrl.u32 %v220_v28, 7 }
  0xb4   :  { %v209_v40 = vadd.f32 %v3454_v37, %v194_v39  ;;  %v222_v37 = vsub.s32 0, %v3561_v29  ;;  %v226_v49 = vsub.s32 1, %v3561_v29 }
  0xb5   :  { %2342 = vmatmul.mubr.msk.f32.gmra.mrb[12].mxu0 %vm230_vm0, %v208_v38 }
  0xb6   :  { %361 = vmatprep.mubr.f32.mxu0 %v3232_v18  ;;  %v3569_v42 = vrot.slane %v218_v41, %v222_v37  ;;  %v3575_v50 = vrot.slane %v218_v41, %v226_v49 }
  0xb9   :  { %2343 = vmatmul.mubr.msk.f32.gmra.mrb[14].mxu0 %vm230_vm0, %v209_v40 }
  0xba   :  { %452 = vmatprep.mubr.f32.mxu0 %v3232_v18 }
  0xbd   :  { %453 = vmatmul.mubr.f32.vlgmr.msra.gmra.mrb[0].mxu0 %v3232_v18 }
  0xbe   :  { %2789 = vmatpush1.bf16.msra.mxu0 %v3463_v43  ;;  %552 = vmatprep.mubr.f32.mxu0 %v3232_v18 }
  0xbf   :  { %2791 = vmatprep.subr.bf16.mxu0 %v3467_v48 }
  0xc2   :  { %2793 = vmatpush1.bf16.msra.mxu0 %v3485_v55 }
  0xc3   :  { %2795 = vmatprep.subr.bf16.mxu0 %v3490_v60 }
  0xc6   :  { %2797 = vmatpush1.bf16.msra.mxu0 %v3508_v4 }
  0xc7   :  { %2799 = vmatprep.subr.bf16.mxu0 %v3513_v10 }
  0xca   :  { %2801 = vmatpush1.bf16.msra.mxu0 %v3525_v15 }
  0xcb   :  { %2803 = vmatprep.subr.bf16.mxu0 %v3418_v22 }
 0x190   :  { %v454_v44 = vpop.f32.mrb[0].mxu0 }
 0x191   :  { %v3059_v45 = vadd.f32 %v454_v44, %v3569_v42  ;;  %v456_v46 = vpop.f32.mrb[1].mxu0 }
 0x192   :  { %v3060_v51 = vadd.f32 %v456_v46, %v3575_v50 }
 0x193   :  { %v2344_v47 = vmul.f32 -1.442695, %v3059_v45 }
 0x194   :  { %v2345_v58 = vmul.f32 -1.442695, %v3060_v51 }
 0x195   :  { %3110 = vpow2.f32 %v2344_v47 }
 0x196   :  { %3112 = vtanh.f32 %v3060_v51 }
 0x19f   :  { %v3111_v52 = vpop.eup %3110 }
 0x1a0   :  { %v464_v53 = vadd.f32 1.0, %v3111_v52  ;;  %v3113_v54 = vpop.eup %3112 }
 0x1a2   :  { %3114 = vrcp.f32 %v464_v53 }
 0x1a3   :  { %3116 = vpow2.f32 %v2345_v58 }
 0x1ac   :  { %v3115_v56 = vpop.eup %3114 }
 0x1ad   :  { %v475_v57 = vmul.f32 %v3115_v56, %v3113_v54  ;;  %v3117_v59 = vpop.eup %3116  ;;  %v474_v62 = vmul.f32 0.0, %v3115_v56 }
 0x1ae   :  { %v471_v61 = vadd.f32 1.0, %v3117_v59 }
 0x1af   :  { %477 = vrot.lane.b32.xlu1 %v475_v57, %s3233_s8 }
 0x1b0   :  { %3118 = vrcp.f32 %v471_v61 }
 0x1ba   :  { %v3119_v1 = vpop.eup %3118 }
 0x221   :  { %v478_v63 = vpop.permute.xlu1 %477 }
 0x222   :  { %v480_v0 = vadd.f32 %v478_v63, %v474_v62 }
 0x224   :  { %3120 = vtanh.f32 %v480_v0 }
 0x22e   :  { %v3121_v3 = vpop.eup %3120 }
 0x22f   :  { %v482_v5 = vmul.f32 %v3121_v3, %v3119_v1 }
 0x231   :  { %484 = vrot.lane.b32.xlu0 %v482_v5, %s3233_s8 }
 0x2a3   :  { %v485_v6 = vpop.permute.xlu0 %484 }
 0x2a4   :  { %2346 = vmatmul.mubr.msk.f32.vlgmr.msra.gmra.mrb[2].mxu0 %vm384_vm1, %v485_v6 }
 0x2a5   :  { %2805 = vmatpush1.bf16.msra.mxu0 %v3463_v43  ;;  %652 = vmatprep.mubr.f32.mxu0 %v3232_v18 }
 0x2a6   :  { %2807 = vmatprep.subr.bf16.mxu0 %v3467_v48 }
 0x2a9   :  { %2809 = vmatpush1.bf16.msra.mxu0 %v3485_v55 }
 0x2aa   :  { %2811 = vmatprep.subr.bf16.mxu0 %v3490_v60 }
 0x2ad   :  { %2813 = vmatpush1.bf16.msra.mxu0 %v3508_v4 }
 0x2ae   :  { %2815 = vmatprep.subr.bf16.mxu0 %v3513_v10 }
 0x2b1   :  { %2817 = vmatpush1.bf16.msra.mxu0 %v3525_v15 }
 0x2b2   :  { %2819 = vmatprep.subr.bf16.mxu0 %v3418_v22 }
 0x377   :  { %v554_v7 = vpop.f32.mrb[2].mxu0 }
 0x378   :  { %v3061_v8 = vadd.f32 %v554_v7, %v3569_v42  ;;  %v556_v11 = vpop.f32.mrb[3].mxu0 }
 0x379   :  { %v3062_v13 = vadd.f32 %v556_v11, %v3575_v50 }
 0x37a   :  { %v2347_v12 = vmul.f32 -1.442695, %v3061_v8 }
 0x37b   :  { %v2348_v21 = vmul.f32 -1.442695, %v3062_v13 }
 0x37c   :  { %3122 = vpow2.f32 %v2347_v12 }
 0x37d   :  { %3124 = vtanh.f32 %v3062_v13 }
 0x386   :  { %v3123_v14 = vpop.eup %3122 }
 0x387   :  { %v564_v16 = vadd.f32 1.0, %v3123_v14  ;;  %v3125_v17 = vpop.eup %3124 }
 0x389   :  { %3126 = vrcp.f32 %v564_v16 }
 0x38a   :  { %3128 = vpow2.f32 %v2348_v21 }
 0x393   :  { %v3127_v19 = vpop.eup %3126 }
 0x394   :  { %v575_v20 = vmul.f32 %v3127_v19, %v3125_v17  ;;  %v3129_v23 = vpop.eup %3128  ;;  %v574_v25 = vmul.f32 %v3127_v19, %v480_v0 }
 0x395   :  { %v571_v24 = vadd.f32 1.0, %v3129_v23 }
 0x396   :  { %577 = vrot.lane.b32.xlu1 %v575_v20, %s3233_s8 }
 0x397   :  { %3130 = vrcp.f32 %v571_v24 }
 0x3a1   :  { %v3131_v30 = vpop.eup %3130 }
 0x408   :  { %v578_v26 = vpop.permute.xlu1 %577 }
 0x409   :  { %v580_v27 = vadd.f32 %v578_v26, %v574_v25 }
 0x40b   :  { %3132 = vtanh.f32 %v580_v27 }
 0x415   :  { %v3133_v31 = vpop.eup %3132 }
 0x416   :  { %v582_v32 = vmul.f32 %v3133_v31, %v3131_v30 }
 0x418   :  { %584 = vrot.lane.b32.xlu0 %v582_v32, %s3233_s8 }
 0x48a   :  { %v585_v33 = vpop.permute.xlu0 %584 }
 0x48b   :  { %2349 = vmatmul.mubr.msk.f32.vlgmr.msra.gmra.mrb[4].mxu0 %vm384_vm1, %v585_v33 }
 0x48c   :  { %2821 = vmatpush1.bf16.msra.mxu0 %v3463_v43  ;;  %752 = vmatprep.mubr.f32.mxu0 %v3232_v18 }
 0x48d   :  { %2823 = vmatprep.subr.bf16.mxu0 %v3467_v48 }
 0x490   :  { %2825 = vmatpush1.bf16.msra.mxu0 %v3485_v55 }
 0x491   :  { %2827 = vmatprep.subr.bf16.mxu0 %v3490_v60 }
 0x494   :  { %2829 = vmatpush1.bf16.msra.mxu0 %v3508_v4 }
 0x495   :  { %2831 = vmatprep.subr.bf16.mxu0 %v3513_v10 }
 0x498   :  { %2833 = vmatpush1.bf16.msra.mxu0 %v3525_v15 }
 0x499   :  { %2835 = vmatprep.subr.bf16.mxu0 %v3418_v22 }
 0x55e   :  { %v654_v34 = vpop.f32.mrb[4].mxu0 }
 0x55f   :  { %v3063_v35 = vadd.f32 %v654_v34, %v3569_v42  ;;  %v656_v36 = vpop.f32.mrb[5].mxu0 }
 0x560   :  { %v3064_v39 = vadd.f32 %v656_v36, %v3575_v50 }
 0x561   :  { %v2350_v38 = vmul.f32 -1.442695, %v3063_v35 }
 0x562   :  { %v2351_v46 = vmul.f32 -1.442695, %v3064_v39 }
 0x563   :  { %3134 = vpow2.f32 %v2350_v38 }
 0x564   :  { %3136 = vtanh.f32 %v3064_v39 }
 0x56d   :  { %v3135_v40 = vpop.eup %3134 }
 0x56e   :  { %v664_v28 = vadd.f32 1.0, %v3135_v40  ;;  %v3137_v41 = vpop.eup %3136 }
 0x570   :  { %3138 = vrcp.f32 %v664_v28 }
 0x571   :  { %3140 = vpow2.f32 %v2351_v46 }
 0x57a   :  { %v3139_v44 = vpop.eup %3138 }
 0x57b   :  { %v675_v45 = vmul.f32 %v3139_v44, %v3137_v41  ;;  %v3141_v47 = vpop.eup %3140  ;;  %v674_v52 = vmul.f32 %v3139_v44, %v580_v27 }
 0x57c   :  { %v671_v51 = vadd.f32 1.0, %v3141_v47 }
 0x57d   :  { %677 = vrot.lane.b32.xlu1 %v675_v45, %s3233_s8 }
 0x57e   :  { %3142 = vrcp.f32 %v671_v51 }
 0x588   :  { %v3143_v56 = vpop.eup %3142 }
 0x5ef   :  { %v678_v53 = vpop.permute.xlu1 %677 }
 0x5f0   :  { %v680_v54 = vadd.f32 %v678_v53, %v674_v52 }
 0x5f2   :  { %3144 = vtanh.f32 %v680_v54 }
 0x5fc   :  { %v3145_v57 = vpop.eup %3144 }
 0x5fd   :  { %v682_v58 = vmul.f32 %v3145_v57, %v3143_v56 }
 0x5ff   :  { %684 = vrot.lane.b32.xlu0 %v682_v58, %s3233_s8 }
 0x671   :  { %v685_v59 = vpop.permute.xlu0 %684 }
 0x672   :  { %2352 = vmatmul.mubr.msk.f32.vlgmr.msra.gmra.mrb[6].mxu0 %vm384_vm1, %v685_v59 }
 0x673   :  { %2837 = vmatpush1.bf16.msra.mxu0 %v3463_v43  ;;  %852 = vmatprep.mubr.f32.mxu0 %v3232_v18 }
 0x674   :  { %2839 = vmatprep.subr.bf16.mxu0 %v3467_v48 }
 0x677   :  { %2841 = vmatpush1.bf16.msra.mxu0 %v3485_v55 }
 0x678   :  { %2843 = vmatprep.subr.bf16.mxu0 %v3490_v60 }
 0x67b   :  { %2845 = vmatpush1.bf16.msra.mxu0 %v3508_v4 }
 0x67c   :  { %2847 = vmatprep.subr.bf16.mxu0 %v3513_v10 }
 0x67f   :  { %2849 = vmatpush1.bf16.msra.mxu0 %v3525_v15 }
 0x680   :  { %2851 = vmatprep.subr.bf16.mxu0 %v3418_v22 }
 0x745   :  { %v754_v61 = vpop.f32.mrb[6].mxu0 }
 0x746   :  { %v3065_v62 = vadd.f32 %v754_v61, %v3569_v42  ;;  %v756_v63 = vpop.f32.mrb[7].mxu0 }
 0x747   :  { %v3066_v1 = vadd.f32 %v756_v63, %v3575_v50 }
 0x748   :  { %v2353_v0 = vmul.f32 -1.442695, %v3065_v62 }
 0x749   :  { %v2354_v11 = vmul.f32 -1.442695, %v3066_v1 }
 0x74a   :  { %3146 = vpow2.f32 %v2353_v0 }
 0x74b   :  { %3148 = vtanh.f32 %v3066_v1 }
 0x754   :  { %v3147_v3 = vpop.eup %3146 }
 0x755   :  { %v764_v5 = vadd.f32 1.0, %v3147_v3  ;;  %v3149_v6 = vpop.eup %3148 }
 0x757   :  { %3150 = vrcp.f32 %v764_v5 }
 0x758   :  { %3152 = vpow2.f32 %v2354_v11 }
 0x761   :  { %v3151_v7 = vpop.eup %3150 }
 0x762   :  { %v775_v8 = vmul.f32 %v3151_v7, %v3149_v6  ;;  %v3153_v12 = vpop.eup %3152  ;;  %v774_v14 = vmul.f32 %v3151_v7, %v680_v54 }
 0x763   :  { %v771_v13 = vadd.f32 1.0, %v3153_v12 }
 0x764   :  { %777 = vrot.lane.b32.xlu1 %v775_v8, %s3233_s8 }
 0x765   :  { %3154 = vrcp.f32 %v771_v13 }
 0x76f   :  { %v3155_v19 = vpop.eup %3154 }
 0x7d6   :  { %v778_v16 = vpop.permute.xlu1 %777 }
 0x7d7   :  { %v780_v17 = vadd.f32 %v778_v16, %v774_v14 }
 0x7d9   :  { %3156 = vtanh.f32 %v780_v17 }
 0x7e3   :  { %v3157_v20 = vpop.eup %3156 }
 0x7e4   :  { %v782_v21 = vmul.f32 %v3157_v20, %v3155_v19 }
 0x7e6   :  { %784 = vrot.lane.b32.xlu0 %v782_v21, %s3233_s8 }
 0x858   :  { %v785_v23 = vpop.permute.xlu0 %784 }
 0x859   :  { %2355 = vmatmul.mubr.msk.f32.vlgmr.msra.gmra.mrb[8].mxu0 %vm384_vm1, %v785_v23 }
 0x85a   :  { %2853 = vmatpush1.bf16.msra.mxu0 %v3463_v43  ;;  %952 = vmatprep.mubr.f32.mxu0 %v3232_v18 }
 0x85b   :  { %2855 = vmatprep.subr.bf16.mxu0 %v3467_v48 }
 0x85e   :  { %2857 = vmatpush1.bf16.msra.mxu0 %v3485_v55 }
 0x85f   :  { %2859 = vmatprep.subr.bf16.mxu0 %v3490_v60 }
 0x862   :  { %2861 = vmatpush1.bf16.msra.mxu0 %v3508_v4 }
 0x863   :  { %2863 = vmatprep.subr.bf16.mxu0 %v3513_v10 }
 0x866   :  { %2865 = vmatpush1.bf16.msra.mxu0 %v3525_v15 }
 0x867   :  { %2867 = vmatprep.subr.bf16.mxu0 %v3418_v22 }
 0x92c   :  { %v854_v24 = vpop.f32.mrb[8].mxu0 }
 0x92d   :  { %v3067_v25 = vadd.f32 %v854_v24, %v3569_v42  ;;  %v856_v26 = vpop.f32.mrb[9].mxu0 }
 0x92e   :  { %v3068_v30 = vadd.f32 %v856_v26, %v3575_v50 }
 0x92f   :  { %v2356_v27 = vmul.f32 -1.442695, %v3067_v25 }
 0x930   :  { %v2357_v36 = vmul.f32 -1.442695, %v3068_v30 }
 0x931   :  { %3158 = vpow2.f32 %v2356_v27 }
 0x932   :  { %3160 = vtanh.f32 %v3068_v30  ;;  %v1183_v30 = vld [vmem:[%s4099_s28] sm:$0xff] }
 0x93b   :  { %v3159_v31 = vpop.eup %3158 }
 0x93c   :  { %v864_v32 = vadd.f32 1.0, %v3159_v31  ;;  %v3161_v33 = vpop.eup %3160  ;;  %v1184_v31 = vld [vmem:[%s4099_s28 + $0x8] sm:$0xff] }
 0x93e   :  { %3162 = vrcp.f32 %v864_v32  ;;  %v1186_v32 = vld [vmem:[%s4099_s28 + $0x18] sm:$0xff] }
 0x93f   :  { %3164 = vpow2.f32 %v2357_v36 }
 0x948   :  { %v3163_v34 = vpop.eup %3162 }
 0x949   :  { %v875_v35 = vmul.f32 %v3163_v34, %v3161_v33  ;;  %v3165_v38 = vpop.eup %3164  ;;  %v874_v40 = vmul.f32 %v3163_v34, %v780_v17 }
 0x94a   :  { %v871_v39 = vadd.f32 1.0, %v3165_v38 }
 0x94b   :  { %877 = vrot.lane.b32.xlu1 %v875_v35, %s3233_s8 }
 0x94c   :  { %3166 = vrcp.f32 %v871_v39 }
 0x956   :  { %v3167_v44 = vpop.eup %3166 }
 0x9bd   :  { %v878_v28 = vpop.permute.xlu1 %877 }
 0x9be   :  { %v880_v41 = vadd.f32 %v878_v28, %v874_v40 }
 0x9c0   :  { %3168 = vtanh.f32 %v880_v41 }
 0x9ca   :  { %v3169_v45 = vpop.eup %3168 }
 0x9cb   :  { %v882_v46 = vmul.f32 %v3169_v45, %v3167_v44  ;;  %v1257_v45 = vld [vmem:[%s4061_s10 + $0x8] sm:$0xff] }
 0x9cd   :  { %884 = vrot.lane.b32.xlu0 %v882_v46, %s3233_s8 }
 0xa3f   :  { %v885_v47 = vpop.permute.xlu0 %884 }
 0xa40   :  { %2358 = vmatmul.mubr.msk.f32.vlgmr.msra.gmra.mrb[10].mxu0 %vm384_vm1, %v885_v47  ;;  %v1259_v47 = vld [vmem:[%s4061_s10 + $0x18] sm:$0xff] }
 0xa41   :  { %2869 = vmatpush1.bf16.msra.mxu0 %v3463_v43  ;;  %1052 = vmatprep.mubr.f32.mxu0 %v3232_v18 }
 0xa42   :  { %2871 = vmatprep.subr.bf16.mxu0 %v3467_v48 }
 0xa45   :  { %2873 = vmatpush1.bf16.msra.mxu0 %v3485_v55 }
 0xa46   :  { %2875 = vmatprep.subr.bf16.mxu0 %v3490_v60 }
 0xa49   :  { %2877 = vmatpush1.bf16.msra.mxu0 %v3508_v4 }
 0xa4a   :  { %2879 = vmatprep.subr.bf16.mxu0 %v3513_v10 }
 0xa4d   :  { %2881 = vmatpush1.bf16.msra.mxu0 %v3525_v15 }
 0xa4e   :  { %2883 = vmatprep.subr.bf16.mxu0 %v3418_v22 }
 0xb13   :  { %v954_v51 = vpop.f32.mrb[10].mxu0 }
 0xb14   :  { %v3069_v52 = vadd.f32 %v954_v51, %v3569_v42  ;;  %v956_v53 = vpop.f32.mrb[11].mxu0 }
 0xb15   :  { %v3070_v56 = vadd.f32 %v956_v53, %v3575_v50 }
 0xb16   :  { %v2359_v54 = vmul.f32 -1.442695, %v3069_v52  ;;  %v3234_v52 = vmov 0.0|0.0  }
 0xb17   :  { %v2360_v63 = vmul.f32 -1.442695, %v3070_v56 }
 0xb18   :  { %3170 = vpow2.f32 %v2359_v54 }
 0xb19   :  { %3172 = vtanh.f32 %v3070_v56 }
 0xb22   :  { %v3171_v57 = vpop.eup %3170 }
 0xb23   :  { %v964_v58 = vadd.f32 1.0, %v3171_v57  ;;  %v3173_v59 = vpop.eup %3172 }
 0xb25   :  { %3174 = vrcp.f32 %v964_v58 }
 0xb26   :  { %3176 = vpow2.f32 %v2360_v63  ;;  %v2367_v63 = vld [vmem:[%s4100_s1] ss:$0 sm:$0xff] }
 0xb2f   :  { %v3175_v61 = vpop.eup %3174 }
 0xb30   :  { %v975_v62 = vmul.f32 %v3175_v61, %v3173_v59  ;;  %v3177_v22 = vpop.eup %3176  ;;  %v974_v1 = vmul.f32 %v3175_v61, %v880_v41 }
 0xb31   :  { %v971_v0 = vadd.f32 1.0, %v3177_v22 }
 0xb32   :  { %977 = vrot.lane.b32.xlu1 %v975_v62, %s3233_s8 }
 0xb33   :  { %3178 = vrcp.f32 %v971_v0  ;;  %v2368_v0 = vld [vmem:[%s4100_s1 + $0x1] ss:$0 sm:$0xff] }
 0xb3d   :  { %v3179_v6 = vpop.eup %3178 }
 0xba4   :  { %v978_v3 = vpop.permute.xlu1 %977 }
 0xba5   :  { %v980_v5 = vadd.f32 %v978_v3, %v974_v1 }
 0xba7   :  { %3180 = vtanh.f32 %v980_v5 }
 0xbb1   :  { %v3181_v7 = vpop.eup %3180 }
 0xbb2   :  { %v982_v8 = vmul.f32 %v3181_v7, %v3179_v6 }
 0xbb4   :  { %984 = vrot.lane.b32.xlu0 %v982_v8, %s3233_s8 }
 0xc26   :  { %v985_v11 = vpop.permute.xlu0 %984 }
 0xc27   :  { %2361 = vmatmul.mubr.msk.f32.vlgmr.msra.gmra.mrb[12].mxu0 %vm384_vm1, %v985_v11  ;;  %v2369_v11 = vld [vmem:[%s4101_s30] ss:$0 sm:$0xff] }
 0xc28   :  { %2885 = vmatpush1.bf16.msra.mxu0 %v3463_v43  ;;  %1152 = vmatprep.mubr.f32.mxu0 %v3232_v18 }
 0xc29   :  { %2887 = vmatprep.subr.bf16.mxu0 %v3467_v48 }
 0xc2c   :  { %2889 = vmatpush1.bf16.msra.mxu0 %v3485_v55 }
 0xc2d   :  { %2891 = vmatprep.subr.bf16.mxu0 %v3490_v60 }
 0xc30   :  { %2893 = vmatpush1.bf16.msra.mxu0 %v3508_v4 }
 0xc31   :  { %2895 = vmatprep.subr.bf16.mxu0 %v3513_v10 }
 0xc34   :  { %2897 = vmatpush1.bf16.msra.mxu0 %v3525_v15 }
 0xc35   :  { %3014 = vmatprep.subr.bf16.mxu0 %v3234_v52 }
 0xcfa   :  { %v1054_v12 = vpop.f32.mrb[12].mxu0 }
 0xcfb   :  { %v3071_v13 = vadd.f32 %v1054_v12, %v3569_v42  ;;  %v1056_v14 = vpop.f32.mrb[13].mxu0 }
 0xcfc   :  { %v3072_v43 = vadd.f32 %v1056_v14, %v3575_v50 }
 0xcfd   :  { %v2362_v16 = vmul.f32 -1.442695, %v3071_v13 }
 0xcfe   :  { %v2363_v4 = vmul.f32 -1.442695, %v3072_v43 }
 0xcff   :  { %3182 = vpow2.f32 %v2362_v16 }
 0xd00   :  { %3184 = vtanh.f32 %v3072_v43 }
 0xd09   :  { %v3183_v17 = vpop.eup %3182 }
 0xd0a   :  { %v1064_v48 = vadd.f32 1.0, %v3183_v17  ;;  %v3185_v55 = vpop.eup %3184  ;;  %v1364_v17 = vld [vmem:[%s4062_s11] sm:$0xff] }
 0xd0c   :  { %3186 = vrcp.f32 %v1064_v48  ;;  %v1365_v48 = vld [vmem:[%s4062_s11 + $0x8] sm:$0xff] }
 0xd0d   :  { %3188 = vpow2.f32 %v2363_v4 }
 0xd16   :  { %v3187_v60 = vpop.eup %3186 }
 0xd17   :  { %v1075_v19 = vmul.f32 %v3187_v60, %v3185_v55  ;;  %v3189_v10 = vpop.eup %3188  ;;  %v1074_v20 = vmul.f32 %v3187_v60, %v980_v5 }
 0xd18   :  { %v1071_v15 = vadd.f32 1.0, %v3189_v10  ;;  %v1366_v10 = vld [vmem:[%s4062_s11 + $0x10] sm:$0xff] }
 0xd19   :  { %1077 = vrot.lane.b32.xlu1 %v1075_v19, %s3233_s8  ;;  %v2907_v19 = vpack.c.bf16 %v1365_v48, %v1364_v17  ;;  %v1559_v17 = vsub.s32 5, %v3561_v29  ;;  %v1638_v48 = vsub.s32 2, %v3561_v29 }
 0xd1a   :  { %3190 = vrcp.f32 %v1071_v15  ;;  %v1367_v15 = vld [vmem:[%s4062_s11 + $0x18] sm:$0xff] }
 0xd24   :  { %v3191_v24 = vpop.eup %3190 }
 0xd8b   :  { %v1078_v21 = vpop.permute.xlu1 %1077 }
 0xd8c   :  { %v1080_v23 = vadd.f32 %v1078_v21, %v1074_v20  ;;  %v2910_v21 = vpack.c.bf16 %v1367_v15, %v1366_v10 }
 0xd8e   :  { %3192 = vtanh.f32 %v1080_v23 }
 0xd98   :  { %v3193_v25 = vpop.eup %3192 }
 0xd99   :  { %v1082_v26 = vmul.f32 %v3193_v25, %v3191_v24  ;;  %v1368_v25 = vld [vmem:[%s4062_s11 + $0x20] sm:$0xff] }
 0xd9b   :  { %1084 = vrot.lane.b32.xlu0 %v1082_v26, %s3233_s8  ;;  %v1369_v26 = vld [vmem:[%s4062_s11 + $0x28] sm:$0xff] }
 0xd9f   :  { %1190 = vperm.xlu0 %3103, %v1183_v30  }
 0xda3   :  { %3106 = vset.pattern.permute.xlu0 %v3231_v9 }
 0xda4   :  { %1222 = vperm.xlu0 %3106, %v1184_v31  }
 0xda8   :  { %3108 = vset.pattern.permute.xlu0 %v3230_v2 }
 0xda9   :  { %1205 = vperm.xlu0 %3108, %v1186_v32  }
 0xdad   :  { %3109 = vset.pattern.permute.xlu0 %v3231_v9 }
 0xe0d   :  { %v1085_v27 = vpop.permute.xlu0 %1084 }
 0xe0e   :  { %2364 = vmatmul.mubr.msk.f32.vlgmr.msra.gmra.mrb[14].mxu0 %vm384_vm1, %v1085_v27 }
 0xe0f   :  { %2698 = vmatprep.mubr.msk.f32.mxu0 %vm3235_vm2, %v3232_v18 }
 0xe1e   :  { %v1191_v61 = vpop.permute.xlu0 %1190 }
 0xe1f   :  { %v1212_v3 = vmul.f32 %v2367_v63, %v1191_v61  ;;  %v1457_v61 = vld [vmem:[%s4064_s13 + $0x50] sm:$0xff] }
 0xe23   :  { %v1223_v8 = vpop.permute.xlu0 %1222 }
 0xe24   :  { %v1238_v13 = vmul.f32 %v2368_v0, %v1223_v8 }
 0xe28   :  { %v1206_v24 = vpop.permute.xlu0 %1205 }
 0xee1   :  { %v1154_v33 = vpop.f32.mrb[14].mxu0 }
 0xee2   :  { %v3073_v34 = vadd.f32 %v1154_v33, %v3569_v42  ;;  %v1156_v35 = vpop.f32.mrb[15].mxu0  ;;  %v1185_v42 = vld [vmem:[%s4099_s28 + $0x10] sm:$0xff] }
 0xee3   :  { %v3074_v38 = vadd.f32 %v1156_v35, %v3575_v50  ;;  %v1256_v50 = vld [vmem:[%s4061_s10] sm:$0xff] }
 0xee4   :  { %v2365_v36 = vmul.f32 -1.442695, %v3073_v34  ;;  %v2898_v46 = vpack.c.bf16 %v1257_v45, %v1256_v50  ;;  %v1449_v50 = vld [vmem:[%s4064_s13 + $0x10] sm:$0xff]  ;;  %v1450_v45 = vld [vmem:[%s4064_s13 + $0x18] sm:$0xff] }
 0xee6   :  { %3194 = vpow2.f32 %v2365_v36  ;;  %2899 = vmatprep.subr.bf16.mxu1 %v2898_v46  ;;  %v1370_v36 = vld [vmem:[%s4062_s11 + $0x30] sm:$0xff] }
 0xee7   :  { %3196 = vtanh.f32 %v3074_v38  ;;  %2901 = vmatpush3.bf16.msra.mxu1 %v2898_v46 }
 0xef0   :  { %v3195_v39 = vpop.eup %3194 }
 0xef1   :  { %v1164_v40 = vadd.f32 1.0, %v3195_v39  ;;  %v3197_v28 = vpop.eup %3196 }
 0xef3   :  { %3198 = vrcp.f32 %v1164_v40 }
 0xefd   :  { %v3199_v41 = vpop.eup %3198 }
 0xefe   :  { %v1175_v44 = vmul.f32 %v3199_v41, %v3197_v28  ;;  %v1174_v56 = vmul.f32 %v3199_v41, %v1080_v23  ;;  %v1447_v41 = vld [vmem:[%s4064_s13] sm:$0xff] }
 0xf00   :  { %1177 = vrot.lane.b32.xlu1 %v1175_v44, %s3233_s8  ;;  %v1448_v44 = vld [vmem:[%s4064_s13 + $0x8] sm:$0xff] }
 0xf04   :  { %1218 = vperm.xlu1 %3104, %v1183_v30  }
 0xf08   :  { %3105 = vset.pattern.permute.xlu1 %v3230_v2  ;;  %v1258_v2 = vld [vmem:[%s4061_s10 + $0x10] sm:$0xff] }
 0xf09   :  { %1195 = vperm.xlu1 %3105, %v1184_v31   ;;  %v2902_v51 = vpack.c.bf16 %v1259_v47, %v1258_v2  ;;  %v1215_v31 = vmul.f32 %v2367_v63, %v1206_v24  ;;  %v3762_v2 = vpack.c.bf16 %v1450_v45, %v1449_v50  ;;  %v1451_v47 = vld [vmem:[%s4064_s13 + $0x20] sm:$0xff]  ;;  %v1812_v50 = vld [vmem:[%s4066_s15 + $0x10] sm:$0xff]  ;;  %v1813_v45 = vld [vmem:[%s4066_s15 + $0x18] sm:$0xff] }
 0xf0b   :  { %2903 = vmatprep.subr.bf16.mxu1 %v2902_v51 }
 0xf0c   :  { %2905 = vmatpush3.bf16.msra.mxu1 %v2902_v51  ;;  %v1452_v51 = vld [vmem:[%s4064_s13 + $0x28] sm:$0xff] }
 0xf0d   :  { %1200 = vperm.xlu1 %3105, %v1185_v42   ;;  %2906 = vmatprep.subr.bf16.mxu1 %v3234_v52 }
 0xf11   :  { %3107 = vset.pattern.permute.xlu1 %v3231_v9  ;;  %v2366_v9 = vmul.f32 -1.442695, %v3074_v38  ;;  %v1371_v38 = vld [vmem:[%s4062_s11 + $0x38] sm:$0xff] }
 0xf12   :  { %1226 = vperm.xlu1 %3107, %v1185_v42   ;;  %v2916_v40 = vpack.c.bf16 %v1371_v38, %v1370_v36  ;;  %v3752_v42 = vpack.c.bf16 %v1448_v44, %v1447_v41  ;;  %v1811_v41 = vld [vmem:[%s4066_s15 + $0x8] sm:$0xff] }
 0xf13   :  { %3200 = vpow2.f32 %v2366_v9  ;;  %v3774_v9 = vpack.c.bf16 %v1452_v51, %v1451_v47  ;;  %v1815_v47 = vld [vmem:[%s4066_s15 + $0x28] sm:$0xff] }
 0xf16   :  { %1230 = vperm.xlu1 %3107, %v1186_v32   ;;  %v2913_v32 = vpack.c.bf16 %v1369_v26, %v1368_v25 }
 0xf1d   :  { %v3201_v53 = vpop.eup %3200 }
 0xf1e   :  { %v1171_v54 = vadd.f32 1.0, %v3201_v53  ;;  %v1453_v53 = vld [vmem:[%s4064_s13 + $0x30] sm:$0xff] }
 0xf20   :  { %3202 = vrcp.f32 %v1171_v54  ;;  %v1454_v54 = vld [vmem:[%s4064_s13 + $0x38] sm:$0xff] }
 0xf2a   :  { %v3203_v59 = vpop.eup %3202 }
 0xf72   :  { %v1178_v57 = vpop.permute.xlu1 %1177 }
 0xf73   :  { %v1180_v58 = vadd.f32 %v1178_v57, %v1174_v56  ;;  %v3784_v56 = vpack.c.bf16 %v1454_v54, %v1453_v53  ;;  %v1455_v57 = vld [vmem:[%s4064_s13 + $0x40] sm:$0xff]  ;;  %v1817_v53 = vld [vmem:[%s4066_s15 + $0x38] sm:$0xff] }
 0xf75   :  { %3204 = vtanh.f32 %v1180_v58  ;;  %v1456_v58 = vld [vmem:[%s4064_s13 + $0x48] sm:$0xff] }
 0xf7f   :  { %v3205_v62 = vpop.eup %3204 }
 0xf80   :  { %v1182_v22 = vmul.f32 %v3205_v62, %v3203_v59  ;;  %v3794_v59 = vpack.c.bf16 %v1456_v58, %v1455_v57  ;;  %v1458_v62 = vld [vmem:[%s4064_s13 + $0x58] sm:$0xff]  ;;  %v1818_v57 = vld [vmem:[%s4067_s16] sm:$0xff]  ;;  %v1819_v58 = vld [vmem:[%s4067_s16 + $0x8] sm:$0xff] }
 0xf82   :  { %1373 = vrot.lane.b32.xlu1 %v1182_v22, %s3233_s8  ;;  %v1802_v1 = vrot.slane %v1182_v22, 3 }
 0xf83   :  { %v1219_v5 = vpop.permute.xlu1 %1218 }
 0xf84   :  { %v1805_v6 = vsel %vm1804_vm3, %v1182_v22, %v1802_v1  ;;  %v1237_v7 = vmul.f32 %v2368_v0, %v1219_v5  ;;  %v1459_v22 = vld [vmem:[%s4064_s13 + $0x60] sm:$0xff]  ;;  %v1462_v5 = vld [vmem:[%s4064_s13 + $0x78] sm:$0xff] }
 0xf85   :  { %1900 = vrot.lane.b32.xlu0 %v1805_v6, %s3233_s8 }
 0xf86   :  { %v1241_v12 = vadd.f32 %v1237_v7, %v1212_v3  ;;  %v1461_v3 = vld [vmem:[%s4064_s13 + $0x70] sm:$0xff] }
 0xf87   :  { %v3825_v6 = vpack.c.bf16 %v1462_v5, %v1461_v3  ;;  %v1824_v3 = vld [vmem:[%s4067_s16 + $0x30] sm:$0xff]  ;;  %v1825_v5 = vld [vmem:[%s4067_s16 + $0x38] sm:$0xff] }
 0xf88   :  { %v1196_v14 = vpop.permute.xlu1 %1195  ;;  %v1252_v16 = vadd.f32 %v2369_v11, %v1241_v12 }
 0xf89   :  { %v1213_v43 = vmul.f32 %v2367_v63, %v1196_v14 }
 0xf8a   :  { %2517 = vmatprep.mubr.msk.f32.mxu1 %vm230_vm0, %v1252_v16 }
 0xf8b   :  { %v1242_v55 = vadd.f32 %v1238_v13, %v1213_v43  ;;  %v1470_v43 = vsub.s32 4, %v3561_v29 }
 0xf8c   :  { %v1201_v60 = vpop.permute.xlu1 %1200 }
 0xf8d   :  { %v1253_v4 = vadd.f32 %v2369_v11, %v1242_v55  ;;  %v1214_v20 = vmul.f32 %v2367_v63, %v1201_v60  ;;  %v3804_v63 = vpack.c.bf16 %v1458_v62, %v1457_v61  ;;  %v1642_v55 = vsub.s32 6, %v3561_v29  ;;  %v1821_v62 = vld [vmem:[%s4067_s16 + $0x18] sm:$0xff] }
 0xf8e   :  { %v1721_v60 = vsub.s32 3, %v3561_v29  ;;  %v3015_v61 = vpack.c.bf16 %v1819_v58, %v1818_v57  ;;  %v2151_v57 = vld [vmem:[%s4072_s21 + $0x10] sm:$0xff]  ;;  %v2152_v58 = vld [vmem:[%s4072_s21 + $0x18] sm:$0xff] }
 0xf8f   :  { %2518 = vmatmul.mubr.msk.f32.vlgmr.msra.gmra.mrb[0].mxu1 %vm230_vm0, %v1253_v4 }
 0xf90   :  { %2908 = vmatpush3.bf16.msra.mxu1 %v2907_v19  ;;  %v1725_v19 = vsub.s32 7, %v3561_v29  ;;  %3016 = vmatpush3.bf16.msra.mxu0 %v3015_v61  ;;  %v2381_v61 = vld [vmem:[%s4071_s20] ss:$0 sm:$0xff] }
 0xf91   :  { %v1227_v23 = vpop.permute.xlu1 %1226  ;;  %2909 = vmatprep.subr.bf16.mxu1 %v3234_v52  ;;  %3017 = vmatprep.subr.bf16.mxu0 %v3234_v52 }
 0xf92   :  { %v1239_v27 = vmul.f32 %v2368_v0, %v1227_v23 }
 0xf94   :  { %v1243_v30 = vadd.f32 %v1239_v27, %v1214_v20  ;;  %2911 = vmatpush3.bf16.msra.mxu1 %v2910_v21 }
 0xf95   :  { %v1231_v33 = vpop.permute.xlu1 %1230  ;;  %2912 = vmatprep.subr.bf16.mxu1 %v3234_v52 }
 0xf96   :  { %v1254_v34 = vadd.f32 %v2369_v11, %v1243_v30  ;;  %v1240_v35 = vmul.f32 %v2368_v0, %v1231_v33  ;;  %v1460_v0 = vld [vmem:[%s4064_s13 + $0x68] sm:$0xff] }
 0xf97   :  { %v3815_v1 = vpack.c.bf16 %v1460_v0, %v1459_v22  ;;  %v1822_v22 = vld [vmem:[%s4067_s16 + $0x20] sm:$0xff]  ;;  %v1823_v0 = vld [vmem:[%s4067_s16 + $0x28] sm:$0xff] }
 0xf98   :  { %2520 = vmatprep.mubr.msk.f32.mxu1 %vm230_vm0, %v1254_v34  ;;  %v1244_v39 = vadd.f32 %v1240_v35, %v1215_v31  ;;  %2914 = vmatpush3.bf16.msra.mxu1 %v2913_v32 }
 0xf99   :  { %2915 = vmatprep.subr.bf16.mxu1 %v3234_v52 }
 0xf9a   :  { %v1255_v28 = vadd.f32 %v2369_v11, %v1244_v39  ;;  %v2370_v11 = vld [vmem:[%s4063_s12] ss:$0 sm:$0xff] }
 0xf9c   :  { %2521 = vmatmul.mubr.msk.f32.gmra.mrb[2].mxu1 %vm230_vm0, %v1255_v28 }
 0xf9d   :  { %2917 = vmatpush3.bf16.msra.mxu1 %v2916_v40  ;;  %2539 = vmatprep.mubr.msk.f32.mxu1 %vm3235_vm2, %v3232_v18 }
 0xf9e   :  { %2918 = vmatprep.subr.bf16.mxu1 %v3234_v52 }
 0xff4   :  { %v1374_v46 = vpop.permute.xlu1 %1373 }
 0xff5   :  { %2540 = vmatmul.mubr.msk.f32.vlgmr.msra.gmra.mrb[4].mxu1 %vm384_vm1, %v1374_v46  ;;  %v3030_v46 = vpack.c.bf16 %v1813_v45, %v1812_v50 }
 0xff6   :  { %2920 = vmatpush3.bf16.msra.mxu1 %v3752_v42  ;;  %2574 = vmatprep.mubr.msk.f32.mxu1 %vm3235_vm2, %v3232_v18 }
 0xff7   :  { %2921 = vmatprep.subr.bf16.mxu1 %v3234_v52 }
 0xffa   :  { %2923 = vmatpush3.bf16.msra.mxu1 %v3762_v2 }
 0xffb   :  { %2924 = vmatprep.subr.bf16.mxu1 %v3234_v52 }
 0xffe   :  { %2926 = vmatpush3.bf16.msra.mxu1 %v3774_v9 }
 0xfff   :  { %2927 = vmatprep.subr.bf16.mxu1 %v3234_v52 }
0x1002   :  { %2929 = vmatpush3.bf16.msra.mxu1 %v3784_v56 }
0x1003   :  { %2930 = vmatprep.subr.bf16.mxu1 %v3234_v52 }
0x1006   :  { %2932 = vmatpush3.bf16.msra.mxu1 %v3794_v59 }
0x1007   :  { %2933 = vmatprep.subr.bf16.mxu1 %v3234_v52 }
0x100a   :  { %2935 = vmatpush3.bf16.msra.mxu1 %v3804_v63 }
0x100b   :  { %2936 = vmatprep.subr.bf16.mxu1 %v3234_v52 }
0x100e   :  { %2938 = vmatpush3.bf16.msra.mxu1 %v3815_v1 }
0x100f   :  { %2939 = vmatprep.subr.bf16.mxu1 %v3234_v52 }
0x1012   :  { %2941 = vmatpush3.bf16.msra.mxu1 %v3825_v6 }
0x1013   :  { %2942 = vmatprep.subr.bf16.mxu1 %v3234_v52 }
0x1062   :  { %v2519_v7 = vpop.f32.mrb[0].mxu1 }
0x1063   :  { %v1345_v8 = vpop.f32.mrb[1].mxu1  ;;  %v1351_v4 = vadd.f32 %v2519_v7, %v2370_v11  ;;  %v2060_v7 = vld [vmem:[%s4070_s19] sm:$0xff] }
0x1064   :  { %v1346_v10 = vadd.f32 %v2370_v11, %v1345_v8  ;;  %v2061_v8 = vld [vmem:[%s4070_s19 + $0x8] sm:$0xff] }
0x106f   :  { %v2522_v12 = vpop.f32.mrb[2].mxu1 }
0x1070   :  { %v1361_v13 = vadd.f32 %v2522_v12, %v2370_v11  ;;  %v1355_v14 = vpop.f32.mrb[3].mxu1 }
0x1071   :  { %v1356_v16 = vadd.f32 %v2370_v11, %v1355_v14  ;;  %v3039_v11 = vpack.c.bf16 %v2061_v8, %v2060_v7  ;;  %v2376_v14 = vld [vmem:[%s4065_s14] ss:$0 sm:$0xff] }
0x10c8   :  { %v1443_v15 = vpop.f32.mrb[4].mxu1 }
0x10c9   :  { %v2541_v20 = vpop.f32.mrb[5].mxu1  ;;  %v1467_v21 = vrot.slane %v1443_v15, %v222_v37  ;;  %v1471_v23 = vrot.slane %v1443_v15, %v1470_v43  ;;  %v1556_v24 = vrot.slane %v1443_v15, %v226_v49  ;;  %v1560_v25 = vrot.slane %v1443_v15, %v1559_v17  ;;  %v1810_v49 = vld [vmem:[%s4066_s15] sm:$0xff] }
0x10ca   :  { %v1639_v26 = vrot.slane %v1443_v15, %v1638_v48  ;;  %v1643_v27 = vrot.slane %v1443_v15, %v1642_v55  ;;  %v1722_v30 = vrot.slane %v1443_v15, %v1721_v60  ;;  %v1726_v31 = vrot.slane %v1443_v15, %v1725_v19 }
0x10cb   :  { %v1473_v32 = vsel %vm1472_vm4, %v1467_v21, %v1471_v23  ;;  %v1561_v33 = vsel %vm1472_vm4, %v1556_v24, %v1560_v25  ;;  %v3027_v44 = vpack.c.bf16 %v1811_v41, %v1810_v49  ;;  %v2067_v49 = vld [vmem:[%s4070_s19 + $0x38] sm:$0xff] }
0x10cc   :  { %v1474_v34 = vadd.f32 %v1473_v32, %v1346_v10  ;;  %v1562_v35 = vadd.f32 %v1561_v33, %v1351_v4  ;;  %v1644_v36 = vsel %vm1472_vm4, %v1639_v26, %v1643_v27  ;;  %v1727_v38 = vsel %vm1472_vm4, %v1722_v30, %v1726_v31  ;;  %v1975_v31 = vld [vmem:[%s4068_s17] sm:$0xff] }
0x10cd   :  { %v1645_v39 = vadd.f32 %v1644_v36, %v1356_v16  ;;  %v3842_v40 = vadd.f32 %v1727_v38, %v1361_v13  ;;  %v2062_v36 = vld [vmem:[%s4070_s19 + $0x10] sm:$0xff]  ;;  %v2063_v38 = vld [vmem:[%s4070_s19 + $0x18] sm:$0xff] }
0x10ce   :  { %v1475_v28 = vmax.f32 %v1474_v34, 0.0  ;;  %v1563_v29 = vmax.f32 %v1562_v35, 0.0 }
0x10cf   :  { %v1646_v37 = vmax.f32 %v1645_v39, 0.0  ;;  %v3042_v39 = vpack.c.bf16 %v2063_v38, %v2062_v36 }
0x10d0   :  { %2575 = vmatmul.mubr.f32.vlgmr.msra.gmra.mrb[6].mxu1 %v1475_v28  ;;  %v2065_v28 = vld [vmem:[%s4070_s19 + $0x28] sm:$0xff] }
0x10d1   :  { %2944 = vmatpush3.bf16.msra.mxu1 %v3752_v42  ;;  %2609 = vmatprep.mubr.msk.f32.mxu1 %vm3235_vm2, %v3232_v18 }
0x10d2   :  { %2945 = vmatprep.subr.bf16.mxu1 %v3234_v52 }
0x10d5   :  { %2947 = vmatpush3.bf16.msra.mxu1 %v3762_v2 }
0x10d6   :  { %2948 = vmatprep.subr.bf16.mxu1 %v3234_v52 }
0x10d9   :  { %2950 = vmatpush3.bf16.msra.mxu1 %v3774_v9 }
0x10da   :  { %2951 = vmatprep.subr.bf16.mxu1 %v3234_v52 }
0x10dd   :  { %2953 = vmatpush3.bf16.msra.mxu1 %v3784_v56 }
0x10de   :  { %2954 = vmatprep.subr.bf16.mxu1 %v3234_v52 }
0x10e1   :  { %2956 = vmatpush3.bf16.msra.mxu1 %v3794_v59 }
0x10e2   :  { %2957 = vmatprep.subr.bf16.mxu1 %v3234_v52 }
0x10e5   :  { %2959 = vmatpush3.bf16.msra.mxu1 %v3804_v63 }
0x10e6   :  { %2960 = vmatprep.subr.bf16.mxu1 %v3234_v52 }
0x10e9   :  { %2962 = vmatpush3.bf16.msra.mxu1 %v3815_v1 }
0x10ea   :  { %2963 = vmatprep.subr.bf16.mxu1 %v3234_v52 }
0x10ed   :  { %2965 = vmatpush3.bf16.msra.mxu1 %v3825_v6 }
0x10ee   :  { %2966 = vmatprep.subr.bf16.mxu1 %v3234_v52 }
0x10f0   :  { %2610 = vmatmul.mubr.f32.vlgmr.msra.gmra.mrb[8].mxu1 %v1563_v29 }
0x10f1   :  { %2968 = vmatpush3.bf16.msra.mxu1 %v3752_v42  ;;  %2644 = vmatprep.mubr.msk.f32.mxu1 %vm3235_vm2, %v3232_v18 }
0x10f2   :  { %2969 = vmatprep.subr.bf16.mxu1 %v3234_v52 }
0x10f5   :  { %2971 = vmatpush3.bf16.msra.mxu1 %v3762_v2 }
0x10f6   :  { %2972 = vmatprep.subr.bf16.mxu1 %v3234_v52 }
0x10f9   :  { %2974 = vmatpush3.bf16.msra.mxu1 %v3774_v9 }
0x10fa   :  { %2975 = vmatprep.subr.bf16.mxu1 %v3234_v52 }
0x10fd   :  { %2977 = vmatpush3.bf16.msra.mxu1 %v3784_v56 }
0x10fe   :  { %2978 = vmatprep.subr.bf16.mxu1 %v3234_v52 }
0x1101   :  { %2980 = vmatpush3.bf16.msra.mxu1 %v3794_v59 }
0x1102   :  { %2981 = vmatprep.subr.bf16.mxu1 %v3234_v52 }
0x1105   :  { %2983 = vmatpush3.bf16.msra.mxu1 %v3804_v63 }
0x1106   :  { %2984 = vmatprep.subr.bf16.mxu1 %v3234_v52 }
0x1109   :  { %2986 = vmatpush3.bf16.msra.mxu1 %v3815_v1 }
0x110a   :  { %2987 = vmatprep.subr.bf16.mxu1 %v3234_v52 }
0x110d   :  { %2989 = vmatpush3.bf16.msra.mxu1 %v3825_v6 }
0x110e   :  { %2990 = vmatprep.subr.bf16.mxu1 %v3234_v52 }
0x1110   :  { %2645 = vmatmul.mubr.f32.vlgmr.msra.gmra.mrb[10].mxu1 %v1646_v37  ;;  %v2066_v37 = vld [vmem:[%s4070_s19 + $0x30] sm:$0xff] }
0x1111   :  { %2992 = vmatpush3.bf16.msra.mxu1 %v3752_v42  ;;  %2679 = vmatprep.mubr.msk.f32.mxu1 %vm3235_vm2, %v3232_v18  ;;  %v1729_v42 = vmax.f32 %v3842_v40, 0.0  ;;  %v2064_v40 = vld [vmem:[%s4070_s19 + $0x20] sm:$0xff]  ;;  %v3048_v41 = vpack.c.bf16 %v2067_v49, %v2066_v37 }
0x1112   :  { %2993 = vmatprep.subr.bf16.mxu1 %v3234_v52  ;;  %v3045_v29 = vpack.c.bf16 %v2065_v28, %v2064_v40 }
0x1115   :  { %2995 = vmatpush3.bf16.msra.mxu1 %v3762_v2  ;;  %v1814_v2 = vld [vmem:[%s4066_s15 + $0x20] sm:$0xff] }
0x1116   :  { %2996 = vmatprep.subr.bf16.mxu1 %v3234_v52  ;;  %v3033_v51 = vpack.c.bf16 %v1815_v47, %v1814_v2 }
0x1119   :  { %2998 = vmatpush3.bf16.msra.mxu1 %v3774_v9  ;;  %v1816_v9 = vld [vmem:[%s4066_s15 + $0x30] sm:$0xff]  ;;  %s4102_s15 = sld [smem:[#allocation7_spill]] }
0x111a   :  { %2999 = vmatprep.subr.bf16.mxu1 %v3234_v52  ;;  %v3036_v54 = vpack.c.bf16 %v1817_v53, %v1816_v9 }
0x111d   :  { %3001 = vmatpush3.bf16.msra.mxu1 %v3784_v56  ;;  %v1901_v56 = vpop.permute.xlu0 %1900 }
0x111e   :  { %3002 = vmatprep.subr.bf16.mxu1 %v3234_v52 }
0x111f   :  { %v1974_v33 = vld [vmem:[%s4102_s15] sm:$0x3] }
0x1121   :  { %3004 = vmatpush3.bf16.msra.mxu1 %v3794_v59  ;;  %v1820_v59 = vld [vmem:[%s4067_s16 + $0x10] sm:$0xff] }
0x1122   :  { %3005 = vmatprep.subr.bf16.mxu1 %v3234_v52 }
0x1125   :  { %3007 = vmatpush3.bf16.msra.mxu1 %v3804_v63  ;;  %v3018_v63 = vpack.c.bf16 %v1821_v62, %v1820_v59  ;;  %v3054_v59 = vpack.c.bf16 %v2152_v58, %v2151_v57 }
0x1126   :  { %3008 = vmatprep.subr.bf16.mxu1 %v3234_v52 }
0x1127   :  { %3019 = vmatpush3.bf16.msra.mxu0 %v3018_v63 }
0x1128   :  { %3020 = vmatprep.subr.bf16.mxu0 %v3234_v52 }
0x1129   :  { %3010 = vmatpush3.bf16.msra.mxu1 %v3815_v1  ;;  %v3021_v1 = vpack.c.bf16 %v1823_v0, %v1822_v22 }
0x112a   :  { %3011 = vmatprep.subr.bf16.mxu1 %v3234_v52 }
0x112b   :  { %3022 = vmatpush3.bf16.msra.mxu0 %v3021_v1  ;;  %v2234_v1 = vld [vmem:[%s4074_s23] sm:$0xff] }
0x112c   :  { %3023 = vmatprep.subr.bf16.mxu0 %v3234_v52 }
0x112d   :  { %3013 = vmatpush3.bf16.msra.mxu1 %v3825_v6  ;;  %v3024_v6 = vpack.c.bf16 %v1825_v5, %v1824_v3  ;;  %v2383_v5 = vld [vmem:[%s4073_s22] ss:$0 sm:$0xff] }
0x112e   :  { %3026 = vmatprep.subr.bf16.mxu1 %v3234_v52 }
0x112f   :  { %3025 = vmatpush3.bf16.msra.mxu0 %v3024_v6 }
0x1130   :  { %2680 = vmatmul.mubr.f32.vlgmr.msra.gmra.mrb[12].mxu1 %v1729_v42  ;;  %2720 = vmatprep.subr.mxu0 %v3232_v18  ;;  %v2150_v42 = vld [vmem:[%s4072_s21 + $0x8] sm:$0xff] }
0x1131   :  { %3028 = vmatpush3.bf16.msra.mxu1 %v3027_v44  ;;  %2717 = vmatprep.mubr.msk.f32.mxu1 %vm3235_vm2, %v3232_v18  ;;  %v2149_v44 = vld [vmem:[%s4072_s21] sm:$0xff] }
0x1132   :  { %3029 = vmatprep.subr.bf16.mxu1 %v3234_v52  ;;  %v3051_v50 = vpack.c.bf16 %v2150_v42, %v2149_v44 }
0x1135   :  { %3031 = vmatpush3.bf16.msra.mxu1 %v3030_v46 }
0x1136   :  { %3032 = vmatprep.subr.bf16.mxu1 %v3234_v52 }
0x1139   :  { %3034 = vmatpush3.bf16.msra.mxu1 %v3033_v51  ;;  %v2380_v51 = vld [vmem:[%s4069_s18] ss:$0 sm:$0xff] }
0x113a   :  { %3035 = vmatprep.subr.bf16.mxu1 %v3234_v52 }
0x113d   :  { %3037 = vmatpush3.bf16.msra.mxu1 %v3036_v54 }
0x113e   :  { %3038 = vmatprep.subr.bf16.mxu1 %v3234_v52 }
0x1140   :  { %2718 = vmatmul.mubr.msk.f32.vlgmr.msra.gmra.mrb[14].mxu1 %vm384_vm1, %v1901_v56 }
0x1141   :  { %2741 = vmatprep.mubr.msk.f32.mxu1 %vm3235_vm2, %v3232_v18  ;;  %3040 = vmatpush3.bf16.msra.mxu1 %v3039_v11 }
0x1142   :  { %3041 = vmatprep.subr.bf16.mxu1 %v3234_v52 }
0x1145   :  { %3043 = vmatpush3.bf16.msra.mxu1 %v3042_v39 }
0x1146   :  { %3044 = vmatprep.subr.bf16.mxu1 %v3234_v52 }
0x1149   :  { %3046 = vmatpush3.bf16.msra.mxu1 %v3045_v29 }
0x114a   :  { %3047 = vmatprep.subr.bf16.mxu1 %v3234_v52 }
0x114d   :  { %3049 = vmatpush3.bf16.msra.mxu1 %v3048_v41 }
0x11a3   :  { %v1548_v12 = vpop.f32.mrb[6].mxu1 }
0x11a4   :  { %v2576_v13 = vpop.f32.mrb[7].mxu1  ;;  %v1549_v16 = vadd.f32 %v2376_v14, %v1548_v12 }
0x11a6   :  { %v1552_v55 = vmax.f32 %v1549_v16, 0.0 }
0x11c3   :  { %v1630_v43 = vpop.f32.mrb[8].mxu1 }
0x11c4   :  { %v1631_v17 = vadd.f32 %v2376_v14, %v1630_v43  ;;  %v2611_v48 = vpop.f32.mrb[9].mxu1 }
0x11c6   :  { %v1634_v60 = vmax.f32 %v1631_v17, 0.0 }
0x11c8   :  { %v1635_v19 = vmax.f32 %v1552_v55, %v1634_v60 }
0x11e3   :  { %v1713_v4 = vpop.f32.mrb[10].mxu1 }
0x11e4   :  { %v1714_v10 = vadd.f32 %v2376_v14, %v1713_v4  ;;  %v2646_v15 = vpop.f32.mrb[11].mxu1 }
0x11e6   :  { %v1717_v20 = vmax.f32 %v1714_v10, 0.0 }
0x11e8   :  { %v1718_v21 = vmax.f32 %v1635_v19, %v1717_v20 }
0x1203   :  { %v1796_v23 = vpop.f32.mrb[12].mxu1 }
0x1204   :  { %v1797_v24 = vadd.f32 %v2376_v14, %v1796_v23  ;;  %v2681_v25 = vpop.f32.mrb[13].mxu1 }
0x1206   :  { %v1800_v26 = vmax.f32 %v1797_v24, 0.0 }
0x1208   :  { %v1801_v27 = vmax.f32 %v1718_v21, %v1800_v26 }
0x120a   :  { %v1807_v30 = vrot.slane %v1801_v27, 3 }
0x120c   :  { %v1809_v32 = vsel %vm1804_vm3, %v1801_v27, %v1807_v30 }
0x120d   :  { %2699 = vmatmul.mubr.msk.f32.vlgmr.msra.gmra.mrb[16].mxu0 %vm384_vm1, %v1809_v32 }
0x120e   :  { %2721 = vmatpush3.msra.mxu0 %v1975_v31  ;;  %2722 = vmatprep.mubr.msk.f32.mxu0 %vm3235_vm2, %v3232_v18 }
0x120f   :  { %3050 = vmatprep.subr.bf16.mxu0 %v3234_v52 }
0x1211   :  { %2723 = vmatmul.mubr.msk.f32.vlgmr.msra.gmra.mrb[18].mxu0 %vm1976_vm5, %v1974_v33 }
0x1212   :  { %2752 = vmatprep.mubr.msk.f32.mxu0 %vm3235_vm2, %v3232_v18  ;;  %3052 = vmatpush3.bf16.msra.mxu0 %v3051_v50 }
0x1213   :  { %v1970_v34 = vpop.f32.mrb[14].mxu1  ;;  %3053 = vmatprep.subr.bf16.mxu0 %v3234_v52 }
0x1214   :  { %v2719_v35 = vpop.f32.mrb[15].mxu1 }
0x1216   :  { %3055 = vmatpush3.bf16.msra.mxu0 %v3054_v59 }
0x1217   :  { %3056 = vmatprep.subr.bf16.mxu0 %v3234_v52  ;;  %v2235_v52 = vld [vmem:[%s4074_s23 + $0x8] sm:$0xff]  ;;  %s3206_s23 = scalar_lea.vmem %s2326_s26, 32 }
0x1218   :  { %v3057_v3 = vpack.c.bf16 %v2235_v52, %v2234_v1  ;;  %p3207_p0 = scmp.ne.s32.totalorder %s2326_s26, %s3206_s23  ;;  %p3212_p2 = scmp.lt.s32.totalorder %s3206_s23, %s3206_s23 }
0x121a   :  { %p3213_p3 = por %p3212_p2, %p3211_p1 }
0x121c   :  { %p3214_p4 = pnand %p3213_p3, %p3207_p0 }
0x12e0   :  { %v1895_v45 = vpop.f32.mrb[16].mxu0 }
0x12e1   :  { %v1971_v46 = vadd.f32 %v1970_v34, %v1895_v45  ;;  %v2700_v2 = vpop.f32.mrb[17].mxu0 }
0x12e4   :  { %v2046_v47 = vpop.f32.mrb[18].mxu0 }
0x12e5   :  { %v2050_v9 = vadd.f32 %v2046_v47, %v1971_v46  ;;  %v2724_v53 = vpop.f32.mrb[19].mxu0 }
0x12e7   :  { %v2058_v54 = vadd.f32 %v2380_v51, %v2050_v9 }
0x12e9   :  { %v2059_v56 = vmax.f32 %v2058_v54, 0.0 }
0x12eb   :  { %2742 = vmatmul.mubr.msk.f32.vlgmr.msra.gmra.mrb[16].mxu1 %vm384_vm1, %v2059_v56 }
0x13be   :  { %v2144_v62 = vpop.f32.mrb[16].mxu1 }
0x13bf   :  { %v2145_v63 = vadd.f32 %v2381_v61, %v2144_v62  ;;  %v2743_v22 = vpop.f32.mrb[17].mxu1 }
0x13c1   :  { %v2148_v0 = vmax.f32 %v2145_v63, 0.0 }
0x13c3   :  { %2753 = vmatmul.mubr.msk.f32.vlgmr.msra.gmra.mrb[20].mxu0 %vm230_vm0, %v2148_v0 }
0x13c4   :  { %2759 = vmatprep.mubr.msk.f32.mxu0 %vm3235_vm2, %v3232_v18  ;;  %3058 = vmatpush3.bf16.msra.mxu0 %v3057_v3  ;;  %v2385_v18 = vld [vmem:[%s4075_s24] ss:$0 sm:$0xff] }
0x1496   :  { %v2229_v6 = vpop.f32.mrb[20].mxu0 }
0x1497   :  { %v2230_v7 = vadd.f32 %v2383_v5, %v2229_v6  ;;  %v2754_v8 = vpop.f32.mrb[21].mxu0 }
0x1499   :  { %v2233_v11 = vmax.f32 %v2230_v7, 0.0 }
0x149b   :  { %2760 = vmatmul.mubr.msk.f32.vlgmr.msra.gmra.mrb[22].mxu0 %vm2243_vm6, %v2233_v11 }
0x156e   :  { %v2313_v12 = vpop.f32.mrb[22].mxu0 }
0x156f   :  { %v2314_v13 = vadd.f32 %v2385_v18, %v2313_v12  ;;  %v2761_v14 = vpop.f32.mrb[23].mxu0 }
0x1571   :  { %2318 = vst.msk [vmem:[#allocation2] sm:$0x3] %vm2317_vm7, %v2314_v13 }
0x1572   :  { %3217 = shalt.err (!%p3214_p4)
}
0x1573   :  { %s3218_s27 = scalar_lea.hbm %s4076_s25, 32 }
0x1574   :  { %p3219_p5 = scmp.ne.s32.totalorder %s4076_s25, %s3218_s27  ;;  %p3222_p6 = scmp.lt.u32.totalorder %s3218_s27, %s4076_s25 }
0x1576   :  { %p3224_p7 = pnand %p3222_p6, %p3219_p5 }
0x1578   :  { %3227 = shalt.err (!%p3224_p7)
}
0x1579   :  { %2328 = dma.vmem_to_hbm [thread:$0]  %s2326_s26, 32, %s4076_s25, [#allocation3]  }
0x157a   :  { %3228 = dma.done.wait [#allocation3], 32  }
0x157b   :  { %3229 = vsyncadd [#allocation3], 4294967264 }
0x157c   :  { %2332 = vsyncpa [#allocation3], 1 }

</bundles_post_ra>
